<compile_context>
chip_gen: v5e
topology: v5e:2x2
jax: 0.10.0
libtpu: 0.0.40
codegen_flags: <defaults>
</compile_context>

<pallas_src>
import math
from functools import partial

import jax
import jax.numpy as jnp
from jax.experimental import pallas as pl
from jax.experimental.pallas import tpu as pltpu


# ---------------------------------------------------------------------------
# Pallas kernels (whole-array VMEM blocks, batch folded, one invocation each)
# ---------------------------------------------------------------------------
def _conv_bn_kernel(xs_ref, w_ref, b_ref, fb_ref, gb_ref, o_ref):
    """Fused 3x3 conv (single banded matmul) + BatchNorm2d (batch statistics).

    xs_ref: (B*H, KH*K)  bf16  tap-concatenated, row-flattened input
    w_ref : (KH*K, N)    bf16  banded conv weights (taps pre-concatenated)
    b_ref : (1, N)       f32   bias tiled over W            (N = W*Cout)
    fb_ref: (N, N)       f32   BN fold/broadcast matrix  kron(1_{WxW}, I_C)/W
    gb_ref: (2, N)       f32   [gamma tiled ; beta tiled]
    o_ref : (B*H, N)     f32   BN(conv(x))
    """
    BH = o_ref.shape[0]
    c = jnp.dot(xs_ref[...], w_ref[...],
                preferred_element_type=jnp.float32) + b_ref[...]         # (BH, N)

    # Training-mode batch statistics, computed in-kernel: per-channel mean and
    # E[x^2], folded over W and re-broadcast over W by ONE tiny (2,N)x(N,N) dot.
    stats = jnp.concatenate([jnp.sum(c, axis=0, keepdims=True),
                             jnp.sum(c * c, axis=0, keepdims=True)], axis=0)
    folded = jnp.dot(stats, fb_ref[...],
                     preferred_element_type=jnp.float32) * (1.0 / BH)    # (2, N)
    gb = gb_ref[...]
    mean_t = folded[0:1]
    var_t = folded[1:2] - mean_t * mean_t
    scale = gb[0:1] * jax.lax.rsqrt(var_t + 1e-5)
    shift = gb[1:2] - mean_t * scale
    o_ref[...] = c * scale + shift


def _layer_kernel(xs_ref, wd_ref, bd_ref, fb_ref, gb_ref,
                  w1_ref, b1_ref, w2_ref, b2_ref, gm_ref, o_ref, *, B, Ho):
    """Fused encoder layer (one ConvBlock, stride 2):
       LeakyReLU -> conv(s=2) -> BN(batch stats) -> ResBlock -> ECA -> +res.

    xs_ref: (B*Ho, 2*Ks)  bf16  space-to-depth + 2-tap-concatenated input
    wd_ref: (2*Ks, N)     bf16  banded stride-2 conv weights
    bd_ref: (1, N)        f32   conv bias tiled over W        (N = Wo*Cout)
    fb_ref: (N, N)        f32   BN fold/broadcast matrix
    gb_ref: (2, N)        f32   [gamma tiled ; beta tiled]
    w1/w2 : (3*N, N)      bf16  ResBlock banded 3x3 conv weights
    b1/b2 : (1, N)        f32   ResBlock conv biases (tiled)
    gm_ref: (N, C)        f32   GAP-fold * ECA band matrix (incl. 1/(Ho*Wo))
    o_ref : (B*Ho, N)     f32   layer output
    """
    BH, N = o_ref.shape
    C = gm_ref.shape[1]
    Wo = N // C

    # LeakyReLU(0.2) pre-activation.  leaky(0) == 0, so applying it after the
    # wrapper's zero-pad / space-to-depth / tap-concat is exact.
    x = xs_ref[...]
    x = jnp.where(x >= 0, x, x * 0.2)

    # Stride-2 down-conv: ONE banded MXU matmul (2 row taps pre-concatenated).
    c = jnp.dot(x, wd_ref[...],
                preferred_element_type=jnp.float32) + bd_ref[...]        # (BH, N)

    # BatchNorm2d, training-mode batch statistics, in-kernel.
    stats = jnp.concatenate([jnp.sum(c, axis=0, keepdims=True),
                             jnp.sum(c * c, axis=0, keepdims=True)], axis=0)
    folded = jnp.dot(stats, fb_ref[...],
                     preferred_element_type=jnp.float32) * (1.0 / BH)
    gb = gb_ref[...]
    mean_t = folded[0:1]
    var_t = folded[1:2] - mean_t * mean_t
    scale = gb[0:1] * jax.lax.rsqrt(var_t + 1e-5)
    shift = gb[1:2] - mean_t * scale
    xb = c * scale + shift                                               # (BH, N)

    # ResBlock 3x3 convs: one banded matmul each.  Vertical halo built from
    # shifted rows + batch-boundary masks (no VMEM scratch round-trip).
    row = jax.lax.broadcasted_iota(jnp.int32, (BH, 1), 0)
    not_top = (row % Ho) != 0
    not_bot = (row % Ho) != (Ho - 1)
    zrow = jnp.zeros((1, N), jnp.float32)

    def conv3x3(t, w_ref, b_ref):
        up = jnp.where(not_top, jnp.concatenate([zrow, t[:BH - 1, :]], axis=0), 0.0)
        dn = jnp.where(not_bot, jnp.concatenate([t[1:, :], zrow], axis=0), 0.0)
        x3 = jnp.concatenate([up, t, dn], axis=-1).astype(w_ref.dtype)   # (BH, 3N)
        return jnp.dot(x3, w_ref[...],
                       preferred_element_type=jnp.float32) + b_ref[...]

    t = jnp.maximum(conv3x3(xb, w1_ref, b1_ref), 0.0)
    r = conv3x3(t, w2_ref, b2_ref) + xb                                  # (BH, N)

    # ECA (per batch element): GAP = VPU row reduction; the W-fold + k-tap
    # channel conv is a single tiny M=B matmul (gm includes 1/(Ho*Wo)); the
    # gate is tiled over W with a lane concat instead of an M=1 matmul.
    r3 = r.reshape(B, Ho, N)
    colsum = jnp.sum(r3, axis=1)                                         # (B, N)
    gate = jax.nn.sigmoid(jnp.dot(colsum, gm_ref[...],
                                  preferred_element_type=jnp.float32))   # (B, C)
    gate_wn = jnp.concatenate([gate] * Wo, axis=-1)                      # (B, N)
    o_ref[...] = (r3 * (1.0 + gate_wn[:, None, :])).reshape(BH, N)       # ECA + res


# ---------------------------------------------------------------------------
# Pallas wrappers
# ---------------------------------------------------------------------------
def _vmem():
    return pl.BlockSpec(memory_space=pltpu.MemorySpace.VMEM)


def conv_bn(xs, p, *, out_rows):
    """conv0: fused stride-1 conv + BN; batch folded into the block (no grid)."""
    N = p["w"].shape[1]
    return pl.pallas_call(
        _conv_bn_kernel,
        out_shape=jax.ShapeDtypeStruct((out_rows, N), jnp.float32),
        in_specs=[_vmem() for _ in range(5)],
        out_specs=_vmem(),
    )(xs, p["w"], p["b"], p["fb"], p["gb"])


def encode_layer(xs, p, *, B, Ho):
    """One encoder layer = ONE pallas_call (leaky+conv+BN+ResBlock+ECA).

    NOTE (v7x): with 2 TensorCores per chip a grid=(B,) "parallel" variant
    emitting per-batch BN partial sums would map one batch element per core;
    on v5e/v6e (single TC) folding the batch into the block is strictly better.
    """
    N = p["wd"].shape[1]
    return pl.pallas_call(
        partial(_layer_kernel, B=B, Ho=Ho),
        out_shape=jax.ShapeDtypeStruct((B * Ho, N), jnp.float32),
        in_specs=[_vmem() for _ in range(10)],
        out_specs=_vmem(),
    )(xs, p["wd"], p["bd"], p["fb"], p["gb"],
      p["w1"], p["b1"], p["w2"], p["b2"], p["gm"])


# ---------------------------------------------------------------------------
# Input prep (tiny XLA glue: pad / space-to-depth / tap-concat, fused by XLA)
# ---------------------------------------------------------------------------
def prep_s1(x):
    """(B,H,W,C) -> (B*H, 3*W*C): pad rows, flatten, concat the 3 row taps."""
    B, H, W, C = x.shape
    xp = jnp.pad(x, ((0, 0), (1, 1), (0, 0), (0, 0))).reshape(B, H + 2, W * C)
    taps = [xp[:, k:k + H, :] for k in range(3)]
    return jnp.concatenate(taps, axis=-1).reshape(B * H, 3 * W * C)


def prep_s2(x):
    """(B,H,W,C) -> (B*H/2, 2*(W/2+1)*4C): pad, space-to-depth, 2-tap concat."""
    B, H, W, C = x.shape
    xp = jnp.pad(x, ((0, 0), (1, 1), (1, 1), (0, 0)))
    Hs, Ws = (H + 2) // 2, (W + 2) // 2
    y = xp.reshape(B, Hs, 2, Ws, 2, C).transpose(0, 1, 3, 2, 4, 5)
    y = y.reshape(B, Hs, Ws * 4 * C)
    Ho = H // 2
    taps = [y[:, a:a + Ho, :] for a in range(2)]
    return jnp.concatenate(taps, axis=-1).reshape(B * Ho, 2 * Ws * 4 * C)


# ---------------------------------------------------------------------------
# One-time weight preprocessing (hoisted out of the jitted forward)
# ---------------------------------------------------------------------------
def make_band_s1(w, W):
    """3x3 stride-1 conv -> 3 banded matrices for W-unpadded flattened rows."""
    KH, KW, Cin, Cout = w.shape
    mats = []
    for kh in range(KH):
        m = jnp.zeros((W * Cin, W * Cout), jnp.float32)
        for kw in range(KW):
            m = m + jnp.kron(jnp.eye(W, W, k=1 - kw, dtype=jnp.float32), w[kh, kw])
        mats.append(m)
    return jnp.stack(mats)                       # (3, W*Cin, W*Cout)


def make_band_s2(w, W):
    """3x3 stride-2 conv -> 2 banded matrices for the space-to-depth input."""
    KH, KW, Cin, Cout = w.shape
    Wo, Ws = W // 2, W // 2 + 1
    wp = jnp.pad(w, ((0, 1), (0, 1), (0, 0), (0, 0)))            # (4,4,Cin,Cout)
    wr = wp.reshape(2, 2, 2, 2, Cin, Cout).transpose(0, 2, 1, 3, 4, 5)
    wr = wr.reshape(2, 2, 4 * Cin, Cout)
    mats = []
    for a in range(2):
        m = jnp.zeros((Ws * 4 * Cin, Wo * Cout), jnp.float32)
        for b in range(2):
            m = m + jnp.kron(jnp.eye(Ws, Wo, k=-b, dtype=jnp.float32), wr[a, b])
        mats.append(m)
    return jnp.stack(mats)                       # (2, Ws*4*Cin, Wo*Cout)


def eca_kernel_size(channels, gamma=2, b=1):
    t = int(abs((math.log2(channels) + b) / gamma))
    k = t if t % 2 else t + 1
    return max(k, 3)


def eca_band_matrix(w1d, C):
    """Banded (C, C) matrix implementing the k-tap ECA 1-D channel conv."""
    k = w1d.shape[0]
    pad = (k - 1) // 2
    m = jnp.zeros((C, C), jnp.float32)
    for j in range(k):
        m = m + w1d[j] * jnp.eye(C, C, k=pad - j, dtype=jnp.float32)
    return m


def preprocess_params(params, H, W):
    """One-time rearrangement of PyTorch-layout weights into banded operands."""
    p0 = params["conv0"]
    C0 = p0["w"].shape[-1]
    N0 = W * C0
    pre = {
        "conv0": {
            "w": make_band_s1(p0["w"], W).reshape(-1, N0).astype(jnp.bfloat16),
            "b": jnp.tile(p0["b"], W).reshape(1, N0),
            "fb": jnp.kron(jnp.ones((W, W), jnp.float32),
                           jnp.eye(C0, dtype=jnp.float32)) / W,
            "gb": jnp.stack([jnp.tile(p0["bn_gamma"], W),
                             jnp.tile(p0["bn_beta"], W)]),
        },
        "layers": [],
    }
    Hi, Wi = H, W
    for p in params["convs"]:
        C = p["w"].shape[-1]
        Ho, Wo = Hi // 2, Wi // 2
        N = Wo * C
        rp = p["res"][0]
        eca = eca_band_matrix(p["eca_w"], C)
        pre["layers"].append({
            "wd": make_band_s2(p["w"], Wi).reshape(-1, N).astype(jnp.bfloat16),
            "bd": jnp.tile(p["b"], Wo).reshape(1, N),
            "fb": jnp.kron(jnp.ones((Wo, Wo), jnp.float32),
                           jnp.eye(C, dtype=jnp.float32)) / Wo,
            "gb": jnp.stack([jnp.tile(p["bn_gamma"], Wo),
                             jnp.tile(p["bn_beta"], Wo)]),
            "w1": make_band_s1(rp["w1"], Wo).reshape(-1, N).astype(jnp.bfloat16),
            "b1": jnp.tile(rp["b1"], Wo).reshape(1, N),
            "w2": make_band_s1(rp["w2"], Wo).reshape(-1, N).astype(jnp.bfloat16),
            "b2": jnp.tile(rp["b2"], Wo).reshape(1, N),
            "gm": jnp.kron(jnp.ones((Wo, 1), jnp.float32), eca) / (Ho * Wo),
        })
        Hi, Wi = Ho, Wo
    return pre


# ---------------------------------------------------------------------------
# Module forward (functional).  NOTE: the in-place LeakyReLU of the PyTorch
# module (which would retroactively mutate previously appended outputs) is
# interpreted functionally.
# ---------------------------------------------------------------------------
def unet_encode(x, pre):
    """x: (B, H, W, in_dim) NHWC.  Returns list of per-layer outputs (NHWC)."""
    B, H, W, _ = x.shape
    c0 = pre["conv0"]
    y = conv_bn(prep_s1(x).astype(jnp.bfloat16), c0, out_rows=B * H)
    x = y.reshape(B, H, W, c0["w"].shape[1] // W)

    outs = []
    for lp in pre["layers"]:
        _, Hi, Wi, _ = x.shape
        Ho, Wo = Hi // 2, Wi // 2
        C = lp["gm"].shape[1]
        y = encode_layer(prep_s2(x).astype(jnp.bfloat16), lp, B=B, Ho=Ho)
        x = y.reshape(B, Ho, Wo, C)
        outs.append(x)
    return outs


# ---------------------------------------------------------------------------
# Pure-JAX reference (f32, HIGHEST precision) for numerical cross-check
# ---------------------------------------------------------------------------
def _ref_conv3x3(x, w, b, stride):
    out = jax.lax.conv_general_dilated(
        x, w, window_strides=(stride, stride), padding=((1, 1), (1, 1)),
        dimension_numbers=("NHWC", "HWIO", "NHWC"),
        precision=jax.lax.Precision.HIGHEST)
    return out + b


def _ref_conv_block(x, p, stride, activation):
    if activation:
        x = jnp.where(x >= 0, x, 0.2 * x)
    x = _ref_conv3x3(x, p["w"], p["b"], stride)
    mean = jnp.mean(x, axis=(0, 1, 2))
    var = jnp.var(x, axis=(0, 1, 2))
    x = (x - mean) * jax.lax.rsqrt(var + 1e-5) * p["bn_gamma"] + p["bn_beta"]
    for rp in p["res"]:
        t = jnp.maximum(_ref_conv3x3(x, rp["w1"], rp["b1"], 1), 0.0)
        x = _ref_conv3x3(t, rp["w2"], rp["b2"], 1) + x
    if "eca_w" in p:
        # TODO(synk): Attention_Assemble.ECA source unavailable; standard ECA
        # (GAP -> k-tap 1-D channel conv, no bias -> sigmoid -> scale) assumed.
        C = x.shape[-1]
        g = jnp.mean(x, axis=(1, 2))
        k = p["eca_w"].shape[0]
        pad = (k - 1) // 2
        gp = jnp.pad(g, ((0, 0), (pad, pad)))
        z = sum(p["eca_w"][j] * gp[:, j:j + C] for j in range(k))
        x = x * jax.nn.sigmoid(z)[:, None, None, :] + x
    return x


def unet_encode_ref(x, params):
    outs = []
    x = _ref_conv_block(x, params["conv0"], 1, False)
    for cp in params["convs"]:
        x = _ref_conv_block(x, cp, 2, True)
        outs.append(x)
    return outs


# ---------------------------------------------------------------------------
# Deterministic parameter init (shapes follow the PyTorch __init__)
# ---------------------------------------------------------------------------
def _conv_params(key, cin, cout, scale=0.05):
    kw, kb = jax.random.split(key)
    return {"w": scale * jax.random.normal(kw, (3, 3, cin, cout), jnp.float32),
            "b": scale * jax.random.normal(kb, (cout,), jnp.float32)}


def _res_params(key, c):
    k1, k2 = jax.random.split(key)
    p1, p2 = _conv_params(k1, c, c), _conv_params(k2, c, c)
    return {"w1": p1["w"], "b1": p1["b"], "w2": p2["w"], "b2": p2["b"]}


def _convblock_params(key, cin, cout, res, atten):
    keys = jax.random.split(key, 2 + max(res, 1))
    p = _conv_params(keys[0], cin, cout)
    p["bn_gamma"] = jnp.ones((cout,), jnp.float32)
    p["bn_beta"] = jnp.zeros((cout,), jnp.float32)
    p["res"] = [_res_params(keys[2 + i], cout) for i in range(res)]
    if atten:
        k = eca_kernel_size(cout)
        p["eca_w"] = 0.3 * jax.random.normal(keys[1], (k,), jnp.float32)
    return p


def init_params(key, in_dim, base_dim, layer):
    key, k0 = jax.random.split(key)
    params = {"conv0": _convblock_params(k0, in_dim, base_dim, res=0, atten=False),
              "convs": []}
    in_d = out_d = base_dim
    for i in range(layer):
        if i > 0:
            in_d = out_d
            out_d = in_d * 2
        key, kk = jax.random.split(key)
        params["convs"].append(_convblock_params(kk, in_d, out_d, res=1, atten=True))
    return params


# ---------------------------------------------------------------------------
if __name__ == "__main__":
    key = jax.random.PRNGKey(0)
    B, H, W = 2, 16, 16
    in_dim, base_dim, layer = 4, 8, 2

    key, kp = jax.random.split(key)
    params = init_params(kp, in_dim, base_dim, layer)

    # One-time weight preprocessing (outside the per-step jit).
    pre = jax.block_until_ready(preprocess_params(params, H, W))

    # Inputs built in PyTorch NCHW convention, transposed once to NHWC.
    key, kx = jax.random.split(key)
    x_nchw = jax.random.normal(kx, (B, in_dim, H, W), jnp.float32)
    x = jnp.transpose(x_nchw, (0, 2, 3, 1))

    outs = jax.block_until_ready(jax.jit(unet_encode)(x, pre))

    # Expected (NHWC): layer 0 -> (B, 8, 8, 8), layer 1 -> (B, 4, 4, 16).
    assert outs[0].shape == (B, H // 2, W // 2, base_dim)
    assert outs[1].shape == (B, H // 4, W // 4, base_dim * 2)
    assert all(bool(jnp.all(jnp.isfinite(o))) for o in outs)

    # Numerical cross-check against the f32 HIGHEST-precision reference.
    # The kernels use bf16 MXU operands, so allow a small bf16-scaled slack.
    refs = jax.block_until_ready(jax.jit(unet_encode_ref)(x, params))
    for o, r in zip(outs, refs):
        err = float(jnp.max(jnp.abs(o - r)))
        tol = 3e-2 + 2e-2 * float(jnp.max(jnp.abs(r)))
        assert err < tol, f"mismatch vs reference: max |diff| = {err} (tol {tol})"

    print("KERNEL_OK")
</pallas_src>

<mosaic_0001>
module attributes {stable_mosaic.version = 11 : i64} {
  func.func @_conv_bn_kernel(%arg0: memref<32x192xbf16, #tpu.memory_space<vmem>>, %arg1: memref<192x128xbf16, #tpu.memory_space<vmem>>, %arg2: memref<1x128xf32, #tpu.memory_space<vmem>>, %arg3: memref<128x128xf32, #tpu.memory_space<vmem>>, %arg4: memref<2x128xf32, #tpu.memory_space<vmem>>, %arg5: memref<32x128xf32, #tpu.memory_space<vmem>>) attributes {dimension_semantics = [], scalar_prefetch = 0 : i64, scratch_operands = 0 : i64, tpu.core_type = #tpu.core_type<tc>} {
    %c0 = arith.constant 0 : index
    %c0_0 = arith.constant 0 : index
    %0 = vector.load %arg0[%c0, %c0_0] : memref<32x192xbf16, #tpu.memory_space<vmem>>, vector<32x192xbf16>
    %c0_1 = arith.constant 0 : index
    %c0_2 = arith.constant 0 : index
    %1 = vector.load %arg1[%c0_1, %c0_2] : memref<192x128xbf16, #tpu.memory_space<vmem>>, vector<192x128xbf16>
    %cst = arith.constant dense<0.000000e+00> : vector<32x128xf32>
    %2 = tpu.matmul %0, %1, %cst {dimension_numbers = #tpu.dot_dimension_numbers<[1], [0], [0], [1], [0, 0, 1, 1], [], []>} : vector<32x192xbf16>, vector<192x128xbf16>, vector<32x128xf32> -> vector<32x128xf32>
    %c0_3 = arith.constant 0 : index
    %c0_4 = arith.constant 0 : index
    %3 = vector.load %arg2[%c0_3, %c0_4] : memref<1x128xf32, #tpu.memory_space<vmem>>, vector<1x128xf32>
    %4 = vector.broadcast %3 : vector<1x128xf32> to vector<32x128xf32>
    %5 = arith.addf %2, %4 : vector<32x128xf32>
    %cst_5 = arith.constant dense<0.000000e+00> : vector<128xf32>
    %6 = vector.multi_reduction <add>, %5, %cst_5 [0] : vector<32x128xf32> to vector<128xf32>
    %7 = vector.shape_cast %6 : vector<128xf32> to vector<1x128xf32>
    %8 = arith.mulf %5, %5 : vector<32x128xf32>
    %cst_6 = arith.constant dense<0.000000e+00> : vector<128xf32>
    %9 = vector.multi_reduction <add>, %8, %cst_6 [0] : vector<32x128xf32> to vector<128xf32>
    %10 = vector.shape_cast %9 : vector<128xf32> to vector<1x128xf32>
    %11 = tpu.concatenate %7, %10 in 0 : vector<1x128xf32>, vector<1x128xf32> -> vector<2x128xf32>
    %c0_7 = arith.constant 0 : index
    %c0_8 = arith.constant 0 : index
    %12 = vector.load %arg3[%c0_7, %c0_8] : memref<128x128xf32, #tpu.memory_space<vmem>>, vector<128x128xf32>
    %cst_9 = arith.constant dense<0.000000e+00> : vector<2x128xf32>
    %13 = tpu.matmul %11, %12, %cst_9 {dimension_numbers = #tpu.dot_dimension_numbers<[1], [0], [0], [1], [0, 0, 1, 1], [], []>} : vector<2x128xf32>, vector<128x128xf32>, vector<2x128xf32> -> vector<2x128xf32>
    %cst_10 = arith.constant 3.125000e-02 : f32
    %14 = vector.broadcast %cst_10 : f32 to vector<2x128xf32>
    %15 = arith.mulf %13, %14 : vector<2x128xf32>
    %c0_11 = arith.constant 0 : index
    %c0_12 = arith.constant 0 : index
    %16 = vector.load %arg4[%c0_11, %c0_12] : memref<2x128xf32, #tpu.memory_space<vmem>>, vector<2x128xf32>
    %17 = vector.extract_strided_slice %15 {offsets = [0, 0], sizes = [1, 128], strides = [1, 1]} : vector<2x128xf32> to vector<1x128xf32>
    %18 = vector.extract_strided_slice %15 {offsets = [1, 0], sizes = [1, 128], strides = [1, 1]} : vector<2x128xf32> to vector<1x128xf32>
    %19 = arith.mulf %17, %17 : vector<1x128xf32>
    %20 = arith.subf %18, %19 : vector<1x128xf32>
    %21 = vector.extract_strided_slice %16 {offsets = [0, 0], sizes = [1, 128], strides = [1, 1]} : vector<2x128xf32> to vector<1x128xf32>
    %cst_13 = arith.constant 9.99999974E-6 : f32
    %22 = vector.broadcast %cst_13 : f32 to vector<1x128xf32>
    %23 = arith.addf %20, %22 : vector<1x128xf32>
    %24 = math.rsqrt %23 : vector<1x128xf32>
    %25 = arith.mulf %21, %24 : vector<1x128xf32>
    %26 = vector.extract_strided_slice %16 {offsets = [1, 0], sizes = [1, 128], strides = [1, 1]} : vector<2x128xf32> to vector<1x128xf32>
    %27 = arith.mulf %17, %25 : vector<1x128xf32>
    %28 = arith.subf %26, %27 : vector<1x128xf32>
    %29 = vector.broadcast %25 : vector<1x128xf32> to vector<32x128xf32>
    %30 = arith.mulf %5, %29 : vector<32x128xf32>
    %31 = vector.broadcast %28 : vector<1x128xf32> to vector<32x128xf32>
    %32 = arith.addf %30, %31 : vector<32x128xf32>
    %c0_14 = arith.constant 0 : index
    %c0_15 = arith.constant 0 : index
    %33 = vector.load %arg5[%c0_14, %c0_15] : memref<32x128xf32, #tpu.memory_space<vmem>>, vector<32x128xf32>
    tpu.vector_store %arg5[%c0_14, %c0_15], %32 {strides = array<i32>} : memref<32x128xf32, #tpu.memory_space<vmem>>, vector<32x128xf32>,
    return
  }
}

module attributes {stable_mosaic.version = 11 : i64} {
  func.func @_layer_kernel(%arg0: memref<16x576xbf16, #tpu.memory_space<vmem>>, %arg1: memref<576x64xbf16, #tpu.memory_space<vmem>>, %arg2: memref<1x64xf32, #tpu.memory_space<vmem>>, %arg3: memref<64x64xf32, #tpu.memory_space<vmem>>, %arg4: memref<2x64xf32, #tpu.memory_space<vmem>>, %arg5: memref<192x64xbf16, #tpu.memory_space<vmem>>, %arg6: memref<1x64xf32, #tpu.memory_space<vmem>>, %arg7: memref<192x64xbf16, #tpu.memory_space<vmem>>, %arg8: memref<1x64xf32, #tpu.memory_space<vmem>>, %arg9: memref<64x8xf32, #tpu.memory_space<vmem>>, %arg10: memref<16x64xf32, #tpu.memory_space<vmem>>) attributes {dimension_semantics = [], scalar_prefetch = 0 : i64, scratch_operands = 0 : i64, tpu.core_type = #tpu.core_type<tc>} {
    %c0 = arith.constant 0 : index
    %c0_0 = arith.constant 0 : index
    %0 = vector.load %arg0[%c0, %c0_0] : memref<16x576xbf16, #tpu.memory_space<vmem>>, vector<16x576xbf16>
    %cst = arith.constant 0.000000e+00 : bf16
    %1 = vector.broadcast %cst : bf16 to vector<16x576xbf16>
    %2 = arith.cmpf oge, %0, %1 : vector<16x576xbf16>
    %cst_1 = arith.constant 2.001950e-01 : bf16
    %3 = vector.broadcast %cst_1 : bf16 to vector<16x576xbf16>
    %4 = arith.mulf %0, %3 : vector<16x576xbf16>
    %5 = arith.select %2, %0, %4 : vector<16x576xi1>, vector<16x576xbf16>
    %c0_2 = arith.constant 0 : index
    %c0_3 = arith.constant 0 : index
    %6 = vector.load %arg1[%c0_2, %c0_3] : memref<576x64xbf16, #tpu.memory_space<vmem>>, vector<576x64xbf16>
    %cst_4 = arith.constant dense<0.000000e+00> : vector<16x64xf32>
    %7 = tpu.matmul %5, %6, %cst_4 {dimension_numbers = #tpu.dot_dimension_numbers<[1], [0], [0], [1], [0, 0, 1, 1], [], []>} : vector<16x576xbf16>, vector<576x64xbf16>, vector<16x64xf32> -> vector<16x64xf32>
    %c0_5 = arith.constant 0 : index
    %c0_6 = arith.constant 0 : index
    %8 = vector.load %arg2[%c0_5, %c0_6] : memref<1x64xf32, #tpu.memory_space<vmem>>, vector<1x64xf32>
    %9 = vector.broadcast %8 : vector<1x64xf32> to vector<16x64xf32>
    %10 = arith.addf %7, %9 : vector<16x64xf32>
    %cst_7 = arith.constant dense<0.000000e+00> : vector<64xf32>
    %11 = vector.multi_reduction <add>, %10, %cst_7 [0] : vector<16x64xf32> to vector<64xf32>
    %12 = vector.shape_cast %11 : vector<64xf32> to vector<1x64xf32>
    %13 = arith.mulf %10, %10 : vector<16x64xf32>
    %cst_8 = arith.constant dense<0.000000e+00> : vector<64xf32>
    %14 = vector.multi_reduction <add>, %13, %cst_8 [0] : vector<16x64xf32> to vector<64xf32>
    %15 = vector.shape_cast %14 : vector<64xf32> to vector<1x64xf32>
    %16 = tpu.concatenate %12, %15 in 0 : vector<1x64xf32>, vector<1x64xf32> -> vector<2x64xf32>
    %c0_9 = arith.constant 0 : index
    %c0_10 = arith.constant 0 : index
    %17 = vector.load %arg3[%c0_9, %c0_10] : memref<64x64xf32, #tpu.memory_space<vmem>>, vector<64x64xf32>
    %cst_11 = arith.constant dense<0.000000e+00> : vector<2x64xf32>
    %18 = tpu.matmul %16, %17, %cst_11 {dimension_numbers = #tpu.dot_dimension_numbers<[1], [0], [0], [1], [0, 0, 1, 1], [], []>} : vector<2x64xf32>, vector<64x64xf32>, vector<2x64xf32> -> vector<2x64xf32>
    %cst_12 = arith.constant 6.250000e-02 : f32
    %19 = vector.broadcast %cst_12 : f32 to vector<2x64xf32>
    %20 = arith.mulf %18, %19 : vector<2x64xf32>
    %c0_13 = arith.constant 0 : index
    %c0_14 = arith.constant 0 : index
    %21 = vector.load %arg4[%c0_13, %c0_14] : memref<2x64xf32, #tpu.memory_space<vmem>>, vector<2x64xf32>
    %22 = vector.extract_strided_slice %20 {offsets = [0, 0], sizes = [1, 64], strides = [1, 1]} : vector<2x64xf32> to vector<1x64xf32>
    %23 = vector.extract_strided_slice %20 {offsets = [1, 0], sizes = [1, 64], strides = [1, 1]} : vector<2x64xf32> to vector<1x64xf32>
    %24 = arith.mulf %22, %22 : vector<1x64xf32>
    %25 = arith.subf %23, %24 : vector<1x64xf32>
    %26 = vector.extract_strided_slice %21 {offsets = [0, 0], sizes = [1, 64], strides = [1, 1]} : vector<2x64xf32> to vector<1x64xf32>
    %cst_15 = arith.constant 9.99999974E-6 : f32
    %27 = vector.broadcast %cst_15 : f32 to vector<1x64xf32>
    %28 = arith.addf %25, %27 : vector<1x64xf32>
    %29 = math.rsqrt %28 : vector<1x64xf32>
    %30 = arith.mulf %26, %29 : vector<1x64xf32>
    %31 = vector.extract_strided_slice %21 {offsets = [1, 0], sizes = [1, 64], strides = [1, 1]} : vector<2x64xf32> to vector<1x64xf32>
    %32 = arith.mulf %22, %30 : vector<1x64xf32>
    %33 = arith.subf %31, %32 : vector<1x64xf32>
    %34 = vector.broadcast %30 : vector<1x64xf32> to vector<16x64xf32>
    %35 = arith.mulf %10, %34 : vector<16x64xf32>
    %36 = vector.broadcast %33 : vector<1x64xf32> to vector<16x64xf32>
    %37 = arith.addf %35, %36 : vector<16x64xf32>
    %38 = tpu.iota {dimensions = array<i32: 0>} : vector<16x1xi32>
    %c8_i32 = arith.constant 8 : i32
    %c0_i32 = arith.constant 0 : i32
    %39 = arith.cmpi eq, %c8_i32, %c0_i32 : i32
    %c1_i32 = arith.constant 1 : i32
    %40 = arith.select %39, %c1_i32, %c8_i32 : i32
    %41 = vector.broadcast %40 : i32 to vector<16x1xi32>
    %42 = arith.remsi %38, %41 : vector<16x1xi32>
    %c0_i32_16 = arith.constant 0 : i32
    %43 = vector.broadcast %c0_i32_16 : i32 to vector<16x1xi32>
    %44 = arith.cmpi ne, %42, %43 : vector<16x1xi32>
    %c0_i32_17 = arith.constant 0 : i32
    %45 = vector.broadcast %c0_i32_17 : i32 to vector<16x1xi32>
    %46 = arith.cmpi slt, %42, %45 : vector<16x1xi32>
    %c0_i32_18 = arith.constant 0 : i32
    %47 = arith.cmpi slt, %40, %c0_i32_18 : i32
    %48 = vector.broadcast %47 : i1 to vector<16x1xi1>
    %49 = vector.broadcast %48 : vector<16x1xi1> to vector<16x1xi1>
    %50 = arith.xori %46, %49 : vector<16x1xi1>
    %51 = arith.andi %50, %44 : vector<16x1xi1>
    %52 = vector.broadcast %40 : i32 to vector<16x1xi32>
    %53 = arith.addi %42, %52 : vector<16x1xi32>
    %54 = arith.select %51, %53, %42 : vector<16x1xi1>, vector<16x1xi32>
    %c0_i32_19 = arith.constant 0 : i32
    %55 = vector.broadcast %c0_i32_19 : i32 to vector<16x1xi32>
    %56 = arith.cmpi ne, %54, %55 : vector<16x1xi32>
    %c8_i32_20 = arith.constant 8 : i32
    %c0_i32_21 = arith.constant 0 : i32
    %57 = arith.cmpi eq, %c8_i32_20, %c0_i32_21 : i32
    %c1_i32_22 = arith.constant 1 : i32
    %58 = arith.select %57, %c1_i32_22, %c8_i32_20 : i32
    %59 = vector.broadcast %58 : i32 to vector<16x1xi32>
    %60 = arith.remsi %38, %59 : vector<16x1xi32>
    %c0_i32_23 = arith.constant 0 : i32
    %61 = vector.broadcast %c0_i32_23 : i32 to vector<16x1xi32>
    %62 = arith.cmpi ne, %60, %61 : vector<16x1xi32>
    %c0_i32_24 = arith.constant 0 : i32
    %63 = vector.broadcast %c0_i32_24 : i32 to vector<16x1xi32>
    %64 = arith.cmpi slt, %60, %63 : vector<16x1xi32>
    %c0_i32_25 = arith.constant 0 : i32
    %65 = arith.cmpi slt, %58, %c0_i32_25 : i32
    %66 = vector.broadcast %65 : i1 to vector<16x1xi1>
    %67 = vector.broadcast %66 : vector<16x1xi1> to vector<16x1xi1>
    %68 = arith.xori %64, %67 : vector<16x1xi1>
    %69 = arith.andi %68, %62 : vector<16x1xi1>
    %70 = vector.broadcast %58 : i32 to vector<16x1xi32>
    %71 = arith.addi %60, %70 : vector<16x1xi32>
    %72 = arith.select %69, %71, %60 : vector<16x1xi1>, vector<16x1xi32>
    %c7_i32 = arith.constant 7 : i32
    %73 = vector.broadcast %c7_i32 : i32 to vector<16x1xi32>
    %74 = arith.cmpi ne, %72, %73 : vector<16x1xi32>
    %cst_26 = arith.constant 0.000000e+00 : f32
    %75 = vector.broadcast %cst_26 : f32 to vector<1x64xf32>
    %76 = vector.extract_strided_slice %37 {offsets = [0, 0], sizes = [15, 64], strides = [1, 1]} : vector<16x64xf32> to vector<15x64xf32>
    %77 = tpu.concatenate %75, %76 in 0 : vector<1x64xf32>, vector<15x64xf32> -> vector<16x64xf32>
    %cst_27 = arith.constant 0.000000e+00 : f32
    %78 = vector.shape_cast %56 : vector<16x1xi1> to vector<16x1xi1>
    %79 = vector.broadcast %78 : vector<16x1xi1> to vector<16x64xi1>
    %80 = vector.broadcast %cst_27 : f32 to vector<16x64xf32>
    %81 = arith.select %79, %77, %80 : vector<16x64xi1>, vector<16x64xf32>
    %82 = vector.extract_strided_slice %37 {offsets = [1, 0], sizes = [15, 64], strides = [1, 1]} : vector<16x64xf32> to vector<15x64xf32>
    %83 = tpu.concatenate %82, %75 in 0 : vector<15x64xf32>, vector<1x64xf32> -> vector<16x64xf32>
    %cst_28 = arith.constant 0.000000e+00 : f32
    %84 = vector.shape_cast %74 : vector<16x1xi1> to vector<16x1xi1>
    %85 = vector.broadcast %84 : vector<16x1xi1> to vector<16x64xi1>
    %86 = vector.broadcast %cst_28 : f32 to vector<16x64xf32>
    %87 = arith.select %85, %83, %86 : vector<16x64xi1>, vector<16x64xf32>
    %88 = tpu.concatenate %81, %37, %87 in 1 : vector<16x64xf32>, vector<16x64xf32>, vector<16x64xf32> -> vector<16x192xf32>
    %89 = arith.truncf %88 : vector<16x192xf32> to vector<16x192xbf16>
    %c0_29 = arith.constant 0 : index
    %c0_30 = arith.constant 0 : index
    %90 = vector.load %arg5[%c0_29, %c0_30] : memref<192x64xbf16, #tpu.memory_space<vmem>>, vector<192x64xbf16>
    %cst_31 = arith.constant dense<0.000000e+00> : vector<16x64xf32>
    %91 = tpu.matmul %89, %90, %cst_31 {dimension_numbers = #tpu.dot_dimension_numbers<[1], [0], [0], [1], [0, 0, 1, 1], [], []>} : vector<16x192xbf16>, vector<192x64xbf16>, vector<16x64xf32> -> vector<16x64xf32>
    %c0_32 = arith.constant 0 : index
    %c0_33 = arith.constant 0 : index
    %92 = vector.load %arg6[%c0_32, %c0_33] : memref<1x64xf32, #tpu.memory_space<vmem>>, vector<1x64xf32>
    %93 = vector.broadcast %92 : vector<1x64xf32> to vector<16x64xf32>
    %94 = arith.addf %91, %93 : vector<16x64xf32>
    %cst_34 = arith.constant 0.000000e+00 : f32
    %95 = vector.broadcast %cst_34 : f32 to vector<16x64xf32>
    %96 = arith.maximumf %94, %95 : vector<16x64xf32>
    %97 = vector.extract_strided_slice %96 {offsets = [0, 0], sizes = [15, 64], strides = [1, 1]} : vector<16x64xf32> to vector<15x64xf32>
    %98 = tpu.concatenate %75, %97 in 0 : vector<1x64xf32>, vector<15x64xf32> -> vector<16x64xf32>
    %cst_35 = arith.constant 0.000000e+00 : f32
    %99 = vector.shape_cast %56 : vector<16x1xi1> to vector<16x1xi1>
    %100 = vector.broadcast %99 : vector<16x1xi1> to vector<16x64xi1>
    %101 = vector.broadcast %cst_35 : f32 to vector<16x64xf32>
    %102 = arith.select %100, %98, %101 : vector<16x64xi1>, vector<16x64xf32>
    %103 = vector.extract_strided_slice %96 {offsets = [1, 0], sizes = [15, 64], strides = [1, 1]} : vector<16x64xf32> to vector<15x64xf32>
    %104 = tpu.concatenate %103, %75 in 0 : vector<15x64xf32>, vector<1x64xf32> -> vector<16x64xf32>
    %cst_36 = arith.constant 0.000000e+00 : f32
    %105 = vector.shape_cast %74 : vector<16x1xi1> to vector<16x1xi1>
    %106 = vector.broadcast %105 : vector<16x1xi1> to vector<16x64xi1>
    %107 = vector.broadcast %cst_36 : f32 to vector<16x64xf32>
    %108 = arith.select %106, %104, %107 : vector<16x64xi1>, vector<16x64xf32>
    %109 = tpu.concatenate %102, %96, %108 in 1 : vector<16x64xf32>, vector<16x64xf32>, vector<16x64xf32> -> vector<16x192xf32>
    %110 = arith.truncf %109 : vector<16x192xf32> to vector<16x192xbf16>
    %c0_37 = arith.constant 0 : index
    %c0_38 = arith.constant 0 : index
    %111 = vector.load %arg7[%c0_37, %c0_38] : memref<192x64xbf16, #tpu.memory_space<vmem>>, vector<192x64xbf16>
    %cst_39 = arith.constant dense<0.000000e+00> : vector<16x64xf32>
    %112 = tpu.matmul %110, %111, %cst_39 {dimension_numbers = #tpu.dot_dimension_numbers<[1], [0], [0], [1], [0, 0, 1, 1], [], []>} : vector<16x192xbf16>, vector<192x64xbf16>, vector<16x64xf32> -> vector<16x64xf32>
    %c0_40 = arith.constant 0 : index
    %c0_41 = arith.constant 0 : index
    %113 = vector.load %arg8[%c0_40, %c0_41] : memref<1x64xf32, #tpu.memory_space<vmem>>, vector<1x64xf32>
    %114 = vector.broadcast %113 : vector<1x64xf32> to vector<16x64xf32>
    %115 = arith.addf %112, %114 : vector<16x64xf32>
    %116 = arith.addf %115, %37 : vector<16x64xf32>
    %117 = vector.shape_cast %116 : vector<16x64xf32> to vector<2x8x64xf32>
    %cst_42 = arith.constant dense<0.000000e+00> : vector<2x64xf32>
    %118 = vector.multi_reduction <add>, %117, %cst_42 [1] : vector<2x8x64xf32> to vector<2x64xf32>
    %c0_43 = arith.constant 0 : index
    %c0_44 = arith.constant 0 : index
    %119 = vector.load %arg9[%c0_43, %c0_44] : memref<64x8xf32, #tpu.memory_space<vmem>>, vector<64x8xf32>
    %cst_45 = arith.constant dense<0.000000e+00> : vector<2x8xf32>
    %120 = tpu.matmul %118, %119, %cst_45 {dimension_numbers = #tpu.dot_dimension_numbers<[1], [0], [0], [1], [0, 0, 1, 1], [], []>} : vector<2x64xf32>, vector<64x8xf32>, vector<2x8xf32> -> vector<2x8xf32>
    %121 = arith.negf %120 : vector<2x8xf32>
    %122 = math.exp %121 : vector<2x8xf32>
    %cst_46 = arith.constant 1.000000e+00 : f32
    %123 = vector.broadcast %cst_46 : f32 to vector<2x8xf32>
    %124 = arith.addf %123, %122 : vector<2x8xf32>
    %125 = arith.divf %123, %124 : vector<2x8xf32>
    %126 = tpu.concatenate %125, %125, %125, %125, %125, %125, %125, %125 in 1 : vector<2x8xf32>, vector<2x8xf32>, vector<2x8xf32>, vector<2x8xf32>, vector<2x8xf32>, vector<2x8xf32>, vector<2x8xf32>, vector<2x8xf32> -> vector<2x64xf32>
    %127 = vector.shape_cast %126 : vector<2x64xf32> to vector<2x1x64xf32>
    %cst_47 = arith.constant 1.000000e+00 : f32
    %128 = vector.broadcast %cst_47 : f32 to vector<2x1x64xf32>
    %129 = arith.addf %128, %127 : vector<2x1x64xf32>
    %130 = vector.broadcast %129 : vector<2x1x64xf32> to vector<2x8x64xf32>
    %131 = arith.mulf %117, %130 : vector<2x8x64xf32>
    %132 = vector.shape_cast %131 : vector<2x8x64xf32> to vector<16x64xf32>
    %c0_48 = arith.constant 0 : index
    %c0_49 = arith.constant 0 : index
    %133 = vector.load %arg10[%c0_48, %c0_49] : memref<16x64xf32, #tpu.memory_space<vmem>>, vector<16x64xf32>
    tpu.vector_store %arg10[%c0_48, %c0_49], %132 {strides = array<i32>} : memref<16x64xf32, #tpu.memory_space<vmem>>, vector<16x64xf32>,
    return
  }
}

module attributes {stable_mosaic.version = 11 : i64} {
  func.func @_layer_kernel(%arg0: memref<8x320xbf16, #tpu.memory_space<vmem>>, %arg1: memref<320x64xbf16, #tpu.memory_space<vmem>>, %arg2: memref<1x64xf32, #tpu.memory_space<vmem>>, %arg3: memref<64x64xf32, #tpu.memory_space<vmem>>, %arg4: memref<2x64xf32, #tpu.memory_space<vmem>>, %arg5: memref<192x64xbf16, #tpu.memory_space<vmem>>, %arg6: memref<1x64xf32, #tpu.memory_space<vmem>>, %arg7: memref<192x64xbf16, #tpu.memory_space<vmem>>, %arg8: memref<1x64xf32, #tpu.memory_space<vmem>>, %arg9: memref<64x16xf32, #tpu.memory_space<vmem>>, %arg10: memref<8x64xf32, #tpu.memory_space<vmem>>) attributes {dimension_semantics = [], scalar_prefetch = 0 : i64, scratch_operands = 0 : i64, tpu.core_type = #tpu.core_type<tc>} {
    %c0 = arith.constant 0 : index
    %c0_0 = arith.constant 0 : index
    %0 = vector.load %arg0[%c0, %c0_0] : memref<8x320xbf16, #tpu.memory_space<vmem>>, vector<8x320xbf16>
    %cst = arith.constant 0.000000e+00 : bf16
    %1 = vector.broadcast %cst : bf16 to vector<8x320xbf16>
    %2 = arith.cmpf oge, %0, %1 : vector<8x320xbf16>
    %cst_1 = arith.constant 2.001950e-01 : bf16
    %3 = vector.broadcast %cst_1 : bf16 to vector<8x320xbf16>
    %4 = arith.mulf %0, %3 : vector<8x320xbf16>
    %5 = arith.select %2, %0, %4 : vector<8x320xi1>, vector<8x320xbf16>
    %c0_2 = arith.constant 0 : index
    %c0_3 = arith.constant 0 : index
    %6 = vector.load %arg1[%c0_2, %c0_3] : memref<320x64xbf16, #tpu.memory_space<vmem>>, vector<320x64xbf16>
    %cst_4 = arith.constant dense<0.000000e+00> : vector<8x64xf32>
    %7 = tpu.matmul %5, %6, %cst_4 {dimension_numbers = #tpu.dot_dimension_numbers<[1], [0], [0], [1], [0, 0, 1, 1], [], []>} : vector<8x320xbf16>, vector<320x64xbf16>, vector<8x64xf32> -> vector<8x64xf32>
    %c0_5 = arith.constant 0 : index
    %c0_6 = arith.constant 0 : index
    %8 = vector.load %arg2[%c0_5, %c0_6] : memref<1x64xf32, #tpu.memory_space<vmem>>, vector<1x64xf32>
    %9 = vector.broadcast %8 : vector<1x64xf32> to vector<8x64xf32>
    %10 = arith.addf %7, %9 : vector<8x64xf32>
    %cst_7 = arith.constant dense<0.000000e+00> : vector<64xf32>
    %11 = vector.multi_reduction <add>, %10, %cst_7 [0] : vector<8x64xf32> to vector<64xf32>
    %12 = vector.shape_cast %11 : vector<64xf32> to vector<1x64xf32>
    %13 = arith.mulf %10, %10 : vector<8x64xf32>
    %cst_8 = arith.constant dense<0.000000e+00> : vector<64xf32>
    %14 = vector.multi_reduction <add>, %13, %cst_8 [0] : vector<8x64xf32> to vector<64xf32>
    %15 = vector.shape_cast %14 : vector<64xf32> to vector<1x64xf32>
    %16 = tpu.concatenate %12, %15 in 0 : vector<1x64xf32>, vector<1x64xf32> -> vector<2x64xf32>
    %c0_9 = arith.constant 0 : index
    %c0_10 = arith.constant 0 : index
    %17 = vector.load %arg3[%c0_9, %c0_10] : memref<64x64xf32, #tpu.memory_space<vmem>>, vector<64x64xf32>
    %cst_11 = arith.constant dense<0.000000e+00> : vector<2x64xf32>
    %18 = tpu.matmul %16, %17, %cst_11 {dimension_numbers = #tpu.dot_dimension_numbers<[1], [0], [0], [1], [0, 0, 1, 1], [], []>} : vector<2x64xf32>, vector<64x64xf32>, vector<2x64xf32> -> vector<2x64xf32>
    %cst_12 = arith.constant 1.250000e-01 : f32
    %19 = vector.broadcast %cst_12 : f32 to vector<2x64xf32>
    %20 = arith.mulf %18, %19 : vector<2x64xf32>
    %c0_13 = arith.constant 0 : index
    %c0_14 = arith.constant 0 : index
    %21 = vector.load %arg4[%c0_13, %c0_14] : memref<2x64xf32, #tpu.memory_space<vmem>>, vector<2x64xf32>
    %22 = vector.extract_strided_slice %20 {offsets = [0, 0], sizes = [1, 64], strides = [1, 1]} : vector<2x64xf32> to vector<1x64xf32>
    %23 = vector.extract_strided_slice %20 {offsets = [1, 0], sizes = [1, 64], strides = [1, 1]} : vector<2x64xf32> to vector<1x64xf32>
    %24 = arith.mulf %22, %22 : vector<1x64xf32>
    %25 = arith.subf %23, %24 : vector<1x64xf32>
    %26 = vector.extract_strided_slice %21 {offsets = [0, 0], sizes = [1, 64], strides = [1, 1]} : vector<2x64xf32> to vector<1x64xf32>
    %cst_15 = arith.constant 9.99999974E-6 : f32
    %27 = vector.broadcast %cst_15 : f32 to vector<1x64xf32>
    %28 = arith.addf %25, %27 : vector<1x64xf32>
    %29 = math.rsqrt %28 : vector<1x64xf32>
    %30 = arith.mulf %26, %29 : vector<1x64xf32>
    %31 = vector.extract_strided_slice %21 {offsets = [1, 0], sizes = [1, 64], strides = [1, 1]} : vector<2x64xf32> to vector<1x64xf32>
    %32 = arith.mulf %22, %30 : vector<1x64xf32>
    %33 = arith.subf %31, %32 : vector<1x64xf32>
    %34 = vector.broadcast %30 : vector<1x64xf32> to vector<8x64xf32>
    %35 = arith.mulf %10, %34 : vector<8x64xf32>
    %36 = vector.broadcast %33 : vector<1x64xf32> to vector<8x64xf32>
    %37 = arith.addf %35, %36 : vector<8x64xf32>
    %38 = tpu.iota {dimensions = array<i32: 0>} : vector<8x1xi32>
    %c4_i32 = arith.constant 4 : i32
    %c0_i32 = arith.constant 0 : i32
    %39 = arith.cmpi eq, %c4_i32, %c0_i32 : i32
    %c1_i32 = arith.constant 1 : i32
    %40 = arith.select %39, %c1_i32, %c4_i32 : i32
    %41 = vector.broadcast %40 : i32 to vector<8x1xi32>
    %42 = arith.remsi %38, %41 : vector<8x1xi32>
    %c0_i32_16 = arith.constant 0 : i32
    %43 = vector.broadcast %c0_i32_16 : i32 to vector<8x1xi32>
    %44 = arith.cmpi ne, %42, %43 : vector<8x1xi32>
    %c0_i32_17 = arith.constant 0 : i32
    %45 = vector.broadcast %c0_i32_17 : i32 to vector<8x1xi32>
    %46 = arith.cmpi slt, %42, %45 : vector<8x1xi32>
    %c0_i32_18 = arith.constant 0 : i32
    %47 = arith.cmpi slt, %40, %c0_i32_18 : i32
    %48 = vector.broadcast %47 : i1 to vector<8x1xi1>
    %49 = vector.broadcast %48 : vector<8x1xi1> to vector<8x1xi1>
    %50 = arith.xori %46, %49 : vector<8x1xi1>
    %51 = arith.andi %50, %44 : vector<8x1xi1>
    %52 = vector.broadcast %40 : i32 to vector<8x1xi32>
    %53 = arith.addi %42, %52 : vector<8x1xi32>
    %54 = arith.select %51, %53, %42 : vector<8x1xi1>, vector<8x1xi32>
    %c0_i32_19 = arith.constant 0 : i32
    %55 = vector.broadcast %c0_i32_19 : i32 to vector<8x1xi32>
    %56 = arith.cmpi ne, %54, %55 : vector<8x1xi32>
    %c4_i32_20 = arith.constant 4 : i32
    %c0_i32_21 = arith.constant 0 : i32
    %57 = arith.cmpi eq, %c4_i32_20, %c0_i32_21 : i32
    %c1_i32_22 = arith.constant 1 : i32
    %58 = arith.select %57, %c1_i32_22, %c4_i32_20 : i32
    %59 = vector.broadcast %58 : i32 to vector<8x1xi32>
    %60 = arith.remsi %38, %59 : vector<8x1xi32>
    %c0_i32_23 = arith.constant 0 : i32
    %61 = vector.broadcast %c0_i32_23 : i32 to vector<8x1xi32>
    %62 = arith.cmpi ne, %60, %61 : vector<8x1xi32>
    %c0_i32_24 = arith.constant 0 : i32
    %63 = vector.broadcast %c0_i32_24 : i32 to vector<8x1xi32>
    %64 = arith.cmpi slt, %60, %63 : vector<8x1xi32>
    %c0_i32_25 = arith.constant 0 : i32
    %65 = arith.cmpi slt, %58, %c0_i32_25 : i32
    %66 = vector.broadcast %65 : i1 to vector<8x1xi1>
    %67 = vector.broadcast %66 : vector<8x1xi1> to vector<8x1xi1>
    %68 = arith.xori %64, %67 : vector<8x1xi1>
    %69 = arith.andi %68, %62 : vector<8x1xi1>
    %70 = vector.broadcast %58 : i32 to vector<8x1xi32>
    %71 = arith.addi %60, %70 : vector<8x1xi32>
    %72 = arith.select %69, %71, %60 : vector<8x1xi1>, vector<8x1xi32>
    %c3_i32 = arith.constant 3 : i32
    %73 = vector.broadcast %c3_i32 : i32 to vector<8x1xi32>
    %74 = arith.cmpi ne, %72, %73 : vector<8x1xi32>
    %cst_26 = arith.constant 0.000000e+00 : f32
    %75 = vector.broadcast %cst_26 : f32 to vector<1x64xf32>
    %76 = vector.extract_strided_slice %37 {offsets = [0, 0], sizes = [7, 64], strides = [1, 1]} : vector<8x64xf32> to vector<7x64xf32>
    %77 = tpu.concatenate %75, %76 in 0 : vector<1x64xf32>, vector<7x64xf32> -> vector<8x64xf32>
    %cst_27 = arith.constant 0.000000e+00 : f32
    %78 = vector.shape_cast %56 : vector<8x1xi1> to vector<8x1xi1>
    %79 = vector.broadcast %78 : vector<8x1xi1> to vector<8x64xi1>
    %80 = vector.broadcast %cst_27 : f32 to vector<8x64xf32>
    %81 = arith.select %79, %77, %80 : vector<8x64xi1>, vector<8x64xf32>
    %82 = vector.extract_strided_slice %37 {offsets = [1, 0], sizes = [7, 64], strides = [1, 1]} : vector<8x64xf32> to vector<7x64xf32>
    %83 = tpu.concatenate %82, %75 in 0 : vector<7x64xf32>, vector<1x64xf32> -> vector<8x64xf32>
    %cst_28 = arith.constant 0.000000e+00 : f32
    %84 = vector.shape_cast %74 : vector<8x1xi1> to vector<8x1xi1>
    %85 = vector.broadcast %84 : vector<8x1xi1> to vector<8x64xi1>
    %86 = vector.broadcast %cst_28 : f32 to vector<8x64xf32>
    %87 = arith.select %85, %83, %86 : vector<8x64xi1>, vector<8x64xf32>
    %88 = tpu.concatenate %81, %37, %87 in 1 : vector<8x64xf32>, vector<8x64xf32>, vector<8x64xf32> -> vector<8x192xf32>
    %89 = arith.truncf %88 : vector<8x192xf32> to vector<8x192xbf16>
    %c0_29 = arith.constant 0 : index
    %c0_30 = arith.constant 0 : index
    %90 = vector.load %arg5[%c0_29, %c0_30] : memref<192x64xbf16, #tpu.memory_space<vmem>>, vector<192x64xbf16>
    %cst_31 = arith.constant dense<0.000000e+00> : vector<8x64xf32>
    %91 = tpu.matmul %89, %90, %cst_31 {dimension_numbers = #tpu.dot_dimension_numbers<[1], [0], [0], [1], [0, 0, 1, 1], [], []>} : vector<8x192xbf16>, vector<192x64xbf16>, vector<8x64xf32> -> vector<8x64xf32>
    %c0_32 = arith.constant 0 : index
    %c0_33 = arith.constant 0 : index
    %92 = vector.load %arg6[%c0_32, %c0_33] : memref<1x64xf32, #tpu.memory_space<vmem>>, vector<1x64xf32>
    %93 = vector.broadcast %92 : vector<1x64xf32> to vector<8x64xf32>
    %94 = arith.addf %91, %93 : vector<8x64xf32>
    %cst_34 = arith.constant 0.000000e+00 : f32
    %95 = vector.broadcast %cst_34 : f32 to vector<8x64xf32>
    %96 = arith.maximumf %94, %95 : vector<8x64xf32>
    %97 = vector.extract_strided_slice %96 {offsets = [0, 0], sizes = [7, 64], strides = [1, 1]} : vector<8x64xf32> to vector<7x64xf32>
    %98 = tpu.concatenate %75, %97 in 0 : vector<1x64xf32>, vector<7x64xf32> -> vector<8x64xf32>
    %cst_35 = arith.constant 0.000000e+00 : f32
    %99 = vector.shape_cast %56 : vector<8x1xi1> to vector<8x1xi1>
    %100 = vector.broadcast %99 : vector<8x1xi1> to vector<8x64xi1>
    %101 = vector.broadcast %cst_35 : f32 to vector<8x64xf32>
    %102 = arith.select %100, %98, %101 : vector<8x64xi1>, vector<8x64xf32>
    %103 = vector.extract_strided_slice %96 {offsets = [1, 0], sizes = [7, 64], strides = [1, 1]} : vector<8x64xf32> to vector<7x64xf32>
    %104 = tpu.concatenate %103, %75 in 0 : vector<7x64xf32>, vector<1x64xf32> -> vector<8x64xf32>
    %cst_36 = arith.constant 0.000000e+00 : f32
    %105 = vector.shape_cast %74 : vector<8x1xi1> to vector<8x1xi1>
    %106 = vector.broadcast %105 : vector<8x1xi1> to vector<8x64xi1>
    %107 = vector.broadcast %cst_36 : f32 to vector<8x64xf32>
    %108 = arith.select %106, %104, %107 : vector<8x64xi1>, vector<8x64xf32>
    %109 = tpu.concatenate %102, %96, %108 in 1 : vector<8x64xf32>, vector<8x64xf32>, vector<8x64xf32> -> vector<8x192xf32>
    %110 = arith.truncf %109 : vector<8x192xf32> to vector<8x192xbf16>
    %c0_37 = arith.constant 0 : index
    %c0_38 = arith.constant 0 : index
    %111 = vector.load %arg7[%c0_37, %c0_38] : memref<192x64xbf16, #tpu.memory_space<vmem>>, vector<192x64xbf16>
    %cst_39 = arith.constant dense<0.000000e+00> : vector<8x64xf32>
    %112 = tpu.matmul %110, %111, %cst_39 {dimension_numbers = #tpu.dot_dimension_numbers<[1], [0], [0], [1], [0, 0, 1, 1], [], []>} : vector<8x192xbf16>, vector<192x64xbf16>, vector<8x64xf32> -> vector<8x64xf32>
    %c0_40 = arith.constant 0 : index
    %c0_41 = arith.constant 0 : index
    %113 = vector.load %arg8[%c0_40, %c0_41] : memref<1x64xf32, #tpu.memory_space<vmem>>, vector<1x64xf32>
    %114 = vector.broadcast %113 : vector<1x64xf32> to vector<8x64xf32>
    %115 = arith.addf %112, %114 : vector<8x64xf32>
    %116 = arith.addf %115, %37 : vector<8x64xf32>
    %117 = vector.shape_cast %116 : vector<8x64xf32> to vector<2x4x64xf32>
    %cst_42 = arith.constant dense<0.000000e+00> : vector<2x64xf32>
    %118 = vector.multi_reduction <add>, %117, %cst_42 [1] : vector<2x4x64xf32> to vector<2x64xf32>
    %c0_43 = arith.constant 0 : index
    %c0_44 = arith.constant 0 : index
    %119 = vector.load %arg9[%c0_43, %c0_44] : memref<64x16xf32, #tpu.memory_space<vmem>>, vector<64x16xf32>
    %cst_45 = arith.constant dense<0.000000e+00> : vector<2x16xf32>
    %120 = tpu.matmul %118, %119, %cst_45 {dimension_numbers = #tpu.dot_dimension_numbers<[1], [0], [0], [1], [0, 0, 1, 1], [], []>} : vector<2x64xf32>, vector<64x16xf32>, vector<2x16xf32> -> vector<2x16xf32>
    %121 = arith.negf %120 : vector<2x16xf32>
    %122 = math.exp %121 : vector<2x16xf32>
    %cst_46 = arith.constant 1.000000e+00 : f32
    %123 = vector.broadcast %cst_46 : f32 to vector<2x16xf32>
    %124 = arith.addf %123, %122 : vector<2x16xf32>
    %125 = arith.divf %123, %124 : vector<2x16xf32>
    %126 = tpu.concatenate %125, %125, %125, %125 in 1 : vector<2x16xf32>, vector<2x16xf32>, vector<2x16xf32>, vector<2x16xf32> -> vector<2x64xf32>
    %127 = vector.shape_cast %126 : vector<2x64xf32> to vector<2x1x64xf32>
    %cst_47 = arith.constant 1.000000e+00 : f32
    %128 = vector.broadcast %cst_47 : f32 to vector<2x1x64xf32>
    %129 = arith.addf %128, %127 : vector<2x1x64xf32>
    %130 = vector.broadcast %129 : vector<2x1x64xf32> to vector<2x4x64xf32>
    %131 = arith.mulf %117, %130 : vector<2x4x64xf32>
    %132 = vector.shape_cast %131 : vector<2x4x64xf32> to vector<8x64xf32>
    %c0_48 = arith.constant 0 : index
    %c0_49 = arith.constant 0 : index
    %133 = vector.load %arg10[%c0_48, %c0_49] : memref<8x64xf32, #tpu.memory_space<vmem>>, vector<8x64xf32>
    tpu.vector_store %arg10[%c0_48, %c0_49], %132 {strides = array<i32>} : memref<8x64xf32, #tpu.memory_space<vmem>>, vector<8x64xf32>,
    return
  }
}

</mosaic_0001>

<bundles_post_ra>
// kernel: unet_encode.3
= control target key start
LH: loop header
LB: loop body
LE: loop exit
PB: predicated region body
PF: predicated region fallthrough
CT: control target
= control target key end

     0   :  { %vm143_vm0 = vcmask 523264   ;;  %vm210_vm1 = vcmask 1040384   ;;  %s544_s1 = inlined_call_operand.vmem [shape: bf16[192,128], index: 1, kind: input, shape index: {}]   ;;  %s545_s0 = inlined_call_operand.vmem [shape: bf16[32,192], index: 0, kind: input, shape index: {}]   ;;  %s546_s2 = inlined_call_operand.vmem [shape: f32[1,128], index: 2, kind: input, shape index: {}]   ;;  %s547_s3 = inlined_call_operand.vmem [shape: f32[128,128], index: 3, kind: input, shape index: {}]   ;;  %s548_s4 = inlined_call_operand.vmem [shape: f32[2,128], index: 4, kind: input, shape index: {}]   ;;  %s549_s5 = inlined_call_operand.vmem [shape: f32[32,128], index: 5, kind: output, shape index: {}]  }
   0x1   :  { %v370_v0 = vld [vmem:[%s544_s1 + $0x38] sm:$0xff]  ;;  %v369_v2 = vld [vmem:[%s544_s1 + $0x30] sm:$0xff]  ;;  %v368_v4 = vld [vmem:[%s544_s1 + $0x28] sm:$0xff] }
   0x2   :  { %v374_v1 = vld [vmem:[%s544_s1 + $0x58] sm:$0xff]  ;;  %150 = vmatpush.bf16.msra.mxu0 %v370_v0  ;;  %375 = vmatpush.bf16.msra.mxu3 %v370_v0  ;;  %v373_v3 = vld [vmem:[%s544_s1 + $0x50] sm:$0xff]  ;;  %v372_v5 = vld [vmem:[%s544_s1 + $0x48] sm:$0xff] }
   0x3   :  { %173 = vmatpush.bf16.msra.mxu1 %v374_v1  ;;  %v367_v6 = vld [vmem:[%s544_s1 + $0x20] sm:$0xff]  ;;  %v297_v9 = vld [vmem:[%s545_s0 + $0x8] sm:$0xf0]  ;;  %v366_v11 = vld [vmem:[%s544_s1 + $0x18] sm:$0xff] }
   0x4   :  { %v371_v7 = vld [vmem:[%s544_s1 + $0x40] sm:$0xff]  ;;  %v365_v12 = vld [vmem:[%s544_s1 + $0x10] sm:$0xff]  ;;  %v364_v13 = vld [vmem:[%s544_s1 + $0x8] sm:$0xff] }
   0x5   :  { %v359_v8 = vld [vmem:[%s545_s0 + $0x4] sm:$0xf]  ;;  %v295_v15 = vld [vmem:[%s545_s0] sm:$0xf]  ;;  %v360_v16 = vld [vmem:[%s545_s0 + $0x4] sm:$0xf0] }
   0x6   :  { %151 = vmatpush.bf16.msra.mxu0 %v369_v2  ;;  %376 = vmatpush.bf16.msra.mxu3 %v369_v2  ;;  %v300_v10 = vor.u32 %v359_v8, %v297_v9  ;;  %v363_v14 = vld [vmem:[%s544_s1] sm:$0xff]  ;;  %v303_v17 = vld [vmem:[%s545_s0 + $0x10] sm:$0xf]  ;;  %v362_v18 = vld [vmem:[%s545_s0 + $0x14] sm:$0xf0]  ;;  %v296_v21 = vor.u32 %v360_v16, %v295_v15 }
   0x7   :  { %174 = vmatpush.bf16.msra.mxu1 %v373_v3  ;;  %v361_v19 = vld [vmem:[%s545_s0 + $0x14] sm:$0xf]  ;;  %v305_v20 = vld [vmem:[%s545_s0 + $0x18] sm:$0xf0]  ;;  %v304_v22 = vor.u32 %v362_v18, %v303_v17  ;;  %v225_v26 = vld [vmem:[%s547_s3 + $0x68] sm:$0xff] }
   0x8   :  { %v308_v23 = vor.u32 %v361_v19, %v305_v20  ;;  %v227_v24 = vld [vmem:[%s547_s3 + $0x78] sm:$0xff]  ;;  %v226_v25 = vld [vmem:[%s547_s3 + $0x70] sm:$0xff]  ;;  %v224_v27 = vld [vmem:[%s547_s3 + $0x60] sm:$0xff] }
   0x9   :  { %228 = vmatpush.msra.mxu2 %v227_v24  ;;  %v223_v28 = vld [vmem:[%s547_s3 + $0x58] sm:$0xff]  ;;  %v222_v29 = vld [vmem:[%s547_s3 + $0x50] sm:$0xff]  ;;  %v221_v30 = vld [vmem:[%s547_s3 + $0x48] sm:$0xff] }
   0xa   :  { %152 = vmatpush.bf16.msra.mxu0 %v368_v4  ;;  %377 = vmatpush.bf16.msra.mxu3 %v368_v4  ;;  %v220_v32 = vld [vmem:[%s547_s3 + $0x40] sm:$0xff]  ;;  %v219_v33 = vld [vmem:[%s547_s3 + $0x38] sm:$0xff]  ;;  %v218_v34 = vld [vmem:[%s547_s3 + $0x30] sm:$0xff] }
   0xb   :  { %175 = vmatpush.bf16.msra.mxu1 %v372_v5  ;;  %229 = vmatpush.msra.mxu2 %v226_v25  ;;  %v217_v35 = vld [vmem:[%s547_s3 + $0x28] sm:$0xff]  ;;  %v216_v36 = vld [vmem:[%s547_s3 + $0x20] sm:$0xff]  ;;  %v215_v37 = vld [vmem:[%s547_s3 + $0x18] sm:$0xff] }
   0xc   :  { %v214_v39 = vld [vmem:[%s547_s3 + $0x10] sm:$0xff]  ;;  %v213_v40 = vld [vmem:[%s547_s3 + $0x8] sm:$0xff]  ;;  %v212_v42 = vld [vmem:[%s547_s3] sm:$0xff] }
   0xd   :  { %230 = vmatpush.msra.mxu2 %v225_v26  ;;  %v383_v43 = vld [vmem:[%s546_s2] ss:$0 sm:$0xff] }
   0xe   :  { %153 = vmatpush.bf16.msra.mxu0 %v367_v6  ;;  %378 = vmatpush.bf16.msra.mxu3 %v367_v6 }
   0xf   :  { %176 = vmatpush.bf16.msra.mxu1 %v371_v7  ;;  %231 = vmatpush.msra.mxu2 %v224_v27 }
  0x11   :  { %232 = vmatpush.msra.mxu2 %v223_v28  ;;  %v249_v28 = vld [vmem:[%s548_s4] sm:$0x3] }
  0x12   :  { %357 = vmatmul.msk.bf16.vlgmr.msra.gmra.mxu1 %vm143_vm0, %v300_v10  ;;  %154 = vmatpush.bf16.msra.mxu0 %v366_v11 }
  0x13   :  { %379 = vmatpush.bf16.msra.mxu3 %v366_v11  ;;  %233 = vmatpush.msra.mxu2 %v222_v29 }
  0x15   :  { %234 = vmatpush.msra.mxu2 %v221_v30 }
  0x16   :  { %155 = vmatpush.bf16.msra.mxu0 %v365_v12 }
  0x17   :  { %380 = vmatpush.bf16.msra.mxu3 %v365_v12  ;;  %235 = vmatpush.msra.mxu2 %v220_v32 }
  0x19   :  { %236 = vmatpush.msra.mxu2 %v219_v33 }
  0x1a   :  { %156 = vmatpush.bf16.msra.mxu0 %v364_v13 }
  0x1b   :  { %381 = vmatpush.bf16.msra.mxu3 %v364_v13  ;;  %237 = vmatpush.msra.mxu2 %v218_v34 }
  0x1d   :  { %238 = vmatpush.msra.mxu2 %v217_v35 }
  0x1e   :  { %157 = vmatpush.bf16.msra.mxu0 %v363_v14 }
  0x1f   :  { %382 = vmatpush.bf16.msra.mxu3 %v363_v14  ;;  %239 = vmatpush.msra.mxu2 %v216_v36 }
  0x21   :  { %158 = vmatmul.bf16.vlgmr.msra.gmra.mxu0 %v296_v21  ;;  %240 = vmatpush.msra.mxu2 %v215_v37 }
  0x22   :  { %163 = vmatmul.bf16.vlgmr.msra.gmra.mxu3 %v304_v22  ;;  %358 = vmatmul.msk.bf16.gmra.mxu1 %vm143_vm0, %v308_v23 }
  0x23   :  { %241 = vmatpush.msra.mxu2 %v214_v39 }
  0x25   :  { %242 = vmatpush.msra.mxu2 %v213_v40 }
  0x27   :  { %243 = vmatpush.msra.mxu2 %v212_v42 }
  0x8f   :  { %v178_v31 = vpop.f32.mrf.mxu1 }
  0x97   :  { %v180_v38 = vpop.f32.mrf.mxu1 }
  0x9e   :  { %v159_v41 = vpop.f32.mrf.mxu0 }
  0x9f   :  { %v160_v44 = vadd.f32 %v383_v43, %v159_v41  ;;  %v183_v45 = vpop.f32.mrf.mxu1 }
  0xa1   :  { %v179_v49 = vadd.f32 %v178_v31, %v160_v44 }
  0xa3   :  { %v197_v53 = vmul.f32 %v179_v49, %v179_v49 }
  0xa5   :  { %v164_v46 = vpop.f32.mrf.mxu3 }
  0xa6   :  { %v161_v47 = vpop.f32.mrf.mxu0  ;;  %v165_v50 = vadd.f32 %v383_v43, %v164_v46 }
  0xa7   :  { %v162_v48 = vadd.f32 %v383_v43, %v161_v47  ;;  %v185_v59 = vpop.f32.mrf.mxu1 }
  0xa8   :  { %v184_v54 = vadd.f32 %v183_v45, %v165_v50 }
  0xa9   :  { %v181_v51 = vadd.f32 %v180_v38, %v162_v48 }
  0xaa   :  { %v199_v60 = vmul.f32 %v184_v54, %v184_v54 }
  0xab   :  { %v198_v52 = vmul.f32 %v181_v51, %v181_v51  ;;  %v188_v55 = vadd.f32 %v181_v51, %v179_v49 }
  0xad   :  { %v166_v56 = vpop.f32.mrf.mxu3  ;;  %v201_v57 = vadd.f32 %v198_v52, %v197_v53  ;;  %v189_v62 = vadd.f32 %v188_v55, %v184_v54 }
  0xae   :  { %v167_v58 = vadd.f32 %v383_v43, %v166_v56 }
  0xaf   :  { %v202_v1 = vadd.f32 %v201_v57, %v199_v60 }
  0xb0   :  { %v186_v61 = vadd.f32 %v185_v59, %v167_v58 }
  0xb2   :  { %v190_v63 = vadd.f32 %v189_v62, %v186_v61  ;;  %v200_v0 = vmul.f32 %v186_v61, %v186_v61 }
  0xb4   :  { %v191_v2 = vrot.slane %v190_v63, 4  ;;  %v203_v3 = vadd.f32 %v202_v1, %v200_v0 }
  0xb6   :  { %v192_v4 = vadd.f32 %v191_v2, %v190_v63  ;;  %v204_v5 = vrot.slane %v203_v3, 4 }
  0xb8   :  { %v193_v6 = vrot.slane %v192_v4, 2  ;;  %v205_v7 = vadd.f32 %v204_v5, %v203_v3 }
  0xba   :  { %v194_v8 = vadd.f32 %v193_v6, %v192_v4  ;;  %v206_v9 = vrot.slane %v205_v7, 2 }
  0xbc   :  { %v195_v10 = vrot.slane %v194_v8, 1  ;;  %v207_v11 = vadd.f32 %v206_v9, %v205_v7 }
  0xbe   :  { %v208_v12 = vrot.slane %v207_v11, 1  ;;  %v196_v13 = vadd.f32 %v195_v10, %v194_v8 }
  0xc0   :  { %v209_v14 = vadd.f32 %v208_v12, %v207_v11 }
  0xc2   :  { %v211_v15 = vsel %vm210_vm1, %v196_v13, %v209_v14 }
  0xc3   :  { %244 = vmatmul.f32.vlgmr.msra.gmra.mxu2 %v211_v15 }
 0x146   :  { %v245_v16 = vpop.f32.mrf.mxu2 }
 0x147   :  { %v248_v17 = vmul.f32 0.03125, %v245_v16 }
 0x149   :  { %v250_v18 = vmul.f32 %v248_v17, %v248_v17 }
 0x14b   :  { %v252_v19 = vrot.slane %v250_v18, 7 }
 0x14d   :  { %v254_v20 = vsub.f32 %v248_v17, %v252_v19 }
 0x14f   :  { %v255_v21 = vadd.f32 1e-05, %v254_v20 }
 0x151   :  { %384 = vrsqrt.f32 %v255_v21  ;;  %vm262_vm3 = vweird.f32 %v255_v21 }
 0x157   :  { %v385_v22 = vpop.eup %384 }
 0x158   :  { %v257_v23 = vmul.f32 %v385_v22, %v255_v21  ;;  %vm263_vm2 = vweird.f32 %v385_v22 }
 0x159   :  { %vm264_vm4 = vmor %vm262_vm3, %vm263_vm2 }
 0x15a   :  { %v258_v24 = vmul.f32 %v385_v22, %v257_v23 }
 0x15c   :  { %v259_v25 = vmul.f32 0.5, %v258_v24 }
 0x15e   :  { %v260_v26 = vsub.f32 1.5, %v259_v25 }
 0x160   :  { %v261_v27 = vmul.f32 %v385_v22, %v260_v26 }
 0x162   :  { %v265_v29 = vsel %vm264_vm4, %v385_v22, %v261_v27 }
 0x163   :  { %v267_v30 = vrot.slane %v265_v29, 1 }
 0x165   :  { %v269_v31 = vmul.f32 %v267_v30, %v249_v28 }
 0x167   :  { %v270_v32 = vmul.f32 %v269_v31, %v248_v17  ;;  %v275_v34 = vperm.slane %v269_v31, 0 }
 0x169   :  { %v272_v33 = vrot.slane %v270_v32, 7  ;;  %v276_v36 = vmul.f32 %v275_v34, %v179_v49  ;;  %v277_v37 = vmul.f32 %v275_v34, %v181_v51  ;;  %v278_v38 = vmul.f32 %v275_v34, %v184_v54 }
 0x16a   :  { %v279_v40 = vmul.f32 %v275_v34, %v186_v61 }
 0x16b   :  { %v274_v35 = vsub.f32 %v249_v28, %v272_v33 }
 0x16d   :  { %v280_v39 = vperm.slane %v274_v35, 1 }
 0x16f   :  { %v281_v41 = vadd.f32 %v280_v39, %v276_v36  ;;  %v282_v42 = vadd.f32 %v280_v39, %v277_v37  ;;  %v283_v43 = vadd.f32 %v280_v39, %v278_v38  ;;  %v284_v44 = vadd.f32 %v280_v39, %v279_v40 }
 0x171   :  { %285 = vst [vmem:[%s549_s5] sm:$0xff] %v281_v41 }
 0x172   :  { %286 = vst [vmem:[%s549_s5 + $0x8] sm:$0xff] %v282_v42 }
 0x173   :  { %287 = vst [vmem:[%s549_s5 + $0x10] sm:$0xff] %v283_v43 }
 0x174   :  { %288 = vst [vmem:[%s549_s5 + $0x18] sm:$0xff] %v284_v44 }

// kernel: unet_encode.4
= control target key start
LH: loop header
LB: loop body
LE: loop exit
PB: predicated region body
PF: predicated region fallthrough
CT: control target
= control target key end

     0   :  { %s1384_s30 = smov 64   ;;  %s1387_s25 = smov 8   ;;  %s1866_s1 = inlined_call_operand.vmem [shape: bf16[576,64], index: 1, kind: input, shape index: {}]   ;;  %s1867_s0 = inlined_call_operand.vmem [shape: bf16[16,576], index: 0, kind: input, shape index: {}]   ;;  %s1868_s2 = inlined_call_operand.vmem [shape: f32[1,64], index: 2, kind: input, shape index: {}]   ;;  %s1869_s3 = inlined_call_operand.vmem [shape: f32[64,64], index: 3, kind: input, shape index: {}]   ;;  %s1870_s5 = inlined_call_operand.vmem [shape: bf16[192,64], index: 5, kind: input, shape index: {}]   ;;  %s1871_s4 = inlined_call_operand.vmem [shape: f32[2,64], index: 4, kind: input, shape index: {}]   ;;  %s1872_s6 = inlined_call_operand.vmem [shape: f32[1,64], index: 6, kind: input, shape index: {}]   ;;  %s1873_s7 = inlined_call_operand.vmem [shape: bf16[192,64], index: 7, kind: input, shape index: {}]   ;;  %s1874_s8 = inlined_call_operand.vmem [shape: f32[1,64], index: 8, kind: input, shape index: {}]   ;;  %s1875_s9 = inlined_call_operand.vmem [shape: f32[64,8], index: 9, kind: input, shape index: {}]   ;;  %s1876_s10 = inlined_call_operand.vmem [shape: f32[16,64], index: 10, kind: output, shape index: {}]  }
   0x1   :  { %v1320_v0 = vld [vmem:[%s1866_s1 + $0xb8] sm:$0xff]  ;;  %v1319_v4 = vld [vmem:[%s1866_s1 + $0xb0] sm:$0xff]  ;;  %v1318_v8 = vld [vmem:[%s1866_s1 + $0xa8] sm:$0xff]  ;;  %s1388_s26 = smov 32   ;;  %s1389_s27 = smov 16  }
   0x2   :  { %v1328_v1 = vld [vmem:[%s1866_s1 + $0xf8] sm:$0xff]  ;;  %439 = vmatpush.bf16.msra.mxu2 %v1320_v0  ;;  %v1327_v5 = vld [vmem:[%s1866_s1 + $0xf0] sm:$0xff]  ;;  %v1326_v9 = vld [vmem:[%s1866_s1 + $0xe8] sm:$0xff]  ;;  %s1390_s28 = smov 56   ;;  %s1391_s29 = smov 48  }
   0x3   :  { %v1304_v2 = vld [vmem:[%s1866_s1 + $0x38] sm:$0xff]  ;;  %453 = vmatpush.bf16.msra.mxu3 %v1328_v1  ;;  %v1303_v6 = vld [vmem:[%s1866_s1 + $0x30] sm:$0xff]  ;;  %v1302_v10 = vld [vmem:[%s1866_s1 + $0x28] sm:$0xff] }
   0x4   :  { %v1312_v3 = vld [vmem:[%s1866_s1 + $0x78] sm:$0xff]  ;;  %411 = vmatpush.bf16.msra.mxu0 %v1304_v2  ;;  %v1311_v7 = vld [vmem:[%s1866_s1 + $0x70] sm:$0xff]  ;;  %v1310_v11 = vld [vmem:[%s1866_s1 + $0x68] sm:$0xff] }
   0x5   :  { %425 = vmatpush.bf16.msra.mxu1 %v1312_v3  ;;  %v1317_v12 = vld [vmem:[%s1866_s1 + $0xa0] sm:$0xff]  ;;  %v1492_v14 = vld [vmem:[%s1867_s0 + $0x8] sm:$0xff]  ;;  %v39_v23 = vld [vmem:[%s1867_s0 + $0x14] sm:$0xff] }
   0x6   :  { %440 = vmatpush.bf16.msra.mxu2 %v1319_v4  ;;  %v1325_v13 = vld [vmem:[%s1866_s1 + $0xe0] sm:$0xff]  ;;  %v44_v18 = vunpack.c.l.bf16 %v1492_v14  ;;  %v45_v19 = vunpack.c.h.bf16 %v1492_v14  ;;  %v1316_v28 = vld [vmem:[%s1866_s1 + $0x98] sm:$0xff]  ;;  %v47_v38 = vunpack.c.l.bf16 %v39_v23  ;;  %v48_v39 = vunpack.c.h.bf16 %v39_v23  ;;  %v1315_v48 = vld [vmem:[%s1866_s1 + $0x90] sm:$0xff] }
   0x7   :  { %454 = vmatpush.bf16.msra.mxu3 %v1327_v5  ;;  %v1497_v15 = vld [vmem:[%s1867_s0 + $0x1c] sm:$0xff]  ;;  %v1323_v49 = vld [vmem:[%s1866_s1 + $0xd0] sm:$0xff]  ;;  %v1314_v56 = vld [vmem:[%s1866_s1 + $0x88] sm:$0xff] }
   0x8   :  { %412 = vmatpush.bf16.msra.mxu0 %v1303_v6  ;;  %v1301_v16 = vld [vmem:[%s1866_s1 + $0x20] sm:$0xff]  ;;  %v49_v20 = vunpack.c.l.bf16 %v1497_v15  ;;  %v50_v21 = vunpack.c.h.bf16 %v1497_v15  ;;  %vm1515_vm0 = vcmp.ge.f32.partialorder %v44_v18, 0.0  ;;  %vm1519_vm1 = vcmp.ge.f32.partialorder %v45_v19, 0.0  ;;  %v1324_v29 = vld [vmem:[%s1866_s1 + $0xd8] sm:$0xff]  ;;  %v1299_v52 = vld [vmem:[%s1866_s1 + $0x10] sm:$0xff] }
   0x9   :  { %426 = vmatpush.bf16.msra.mxu1 %v1311_v7  ;;  %v1309_v17 = vld [vmem:[%s1866_s1 + $0x60] sm:$0xff]  ;;  %v64_v30 = vmul.f32 0.20019531, %v44_v18  ;;  %v65_v31 = vmul.f32 0.20019531, %v45_v19  ;;  %v1300_v34 = vld [vmem:[%s1866_s1 + $0x18] sm:$0xff]  ;;  %vm79_vm6 = vmpackc.low %vm1519_vm1, %vm1515_vm0  ;;  %vm1555_vm7 = vcmp.ge.f32.partialorder %v47_v38, 0.0  ;;  %vm1559_vm8 = vcmp.ge.f32.partialorder %v48_v39, 0.0 }
   0xa   :  { %441 = vmatpush.bf16.msra.mxu2 %v1318_v8  ;;  %v36_v22 = vld [vmem:[%s1867_s0] sm:$0xff]  ;;  %v69_v32 = vmul.f32 0.20019531, %v49_v20  ;;  %v70_v33 = vmul.f32 0.20019531, %v50_v21  ;;  %v1308_v35 = vld [vmem:[%s1866_s1 + $0x58] sm:$0xff]  ;;  %vm1535_vm2 = vcmp.ge.f32.partialorder %v49_v20, 0.0  ;;  %vm1539_vm3 = vcmp.ge.f32.partialorder %v50_v21, 0.0  ;;  %vm81_vm11 = vmpackc.low %vm1559_vm8, %vm1555_vm7 }
   0xb   :  { %455 = vmatpush.bf16.msra.mxu3 %v1326_v9  ;;  %v42_v24 = vunpack.c.l.bf16 %v36_v22  ;;  %v43_v25 = vunpack.c.h.bf16 %v36_v22  ;;  %v67_v46 = vmul.f32 0.20019531, %v47_v38  ;;  %v68_v47 = vmul.f32 0.20019531, %v48_v39  ;;  %vm82_vm9 = vmpackc.low %vm1539_vm3, %vm1535_vm2  ;;  %v1307_v53 = vld [vmem:[%s1866_s1 + $0x50] sm:$0xff]  ;;  %v1322_v57 = vld [vmem:[%s1866_s1 + $0xc8] sm:$0xff] }
   0xc   :  { %413 = vmatpush.bf16.msra.mxu0 %v1302_v10  ;;  %v73_v50 = vpack.c.bf16 %v65_v31, %v64_v30  ;;  %v76_v51 = vpack.c.bf16 %v70_v33, %v69_v32  ;;  %v1298_v58 = vld [vmem:[%s1866_s1 + $0x8] sm:$0xff]  ;;  %v38_v0 = vld [vmem:[%s1867_s0 + $0x10] sm:$0xf]  ;;  %v41_v1 = vld [vmem:[%s1867_s0 + $0x24] sm:$0xf]  ;;  %vm407_vm0 = vcmask 523264  }
   0xd   :  { %427 = vmatpush.bf16.msra.mxu1 %v1310_v11  ;;  %vm1543_vm4 = vcmp.ge.f32.partialorder %v42_v24, 0.0  ;;  %vm1547_vm5 = vcmp.ge.f32.partialorder %v43_v25, 0.0  ;;  %v62_v42 = vmul.f32 0.20019531, %v42_v24  ;;  %v63_v43 = vmul.f32 0.20019531, %v43_v25  ;;  %v1306_v61 = vld [vmem:[%s1866_s1 + $0x48] sm:$0xff]  ;;  %v1313_v6 = vld [vmem:[%s1866_s1 + $0x80] sm:$0xff] }
   0xe   :  { %442 = vmatpush.bf16.msra.mxu2 %v1317_v12  ;;  %vm78_vm10 = vmpackc.low %vm1547_vm5, %vm1543_vm4  ;;  %v75_v55 = vpack.c.bf16 %v68_v47, %v67_v46  ;;  %v85_v59 = vsel %vm79_vm6, %v1492_v14, %v73_v50  ;;  %v88_v60 = vsel %vm82_vm9, %v1497_v15, %v76_v51  ;;  %v1321_v7 = vld [vmem:[%s1866_s1 + $0xc0] sm:$0xff]  ;;  %v46_v10 = vunpack.c.l.bf16 %v38_v0  ;;  %v1330_v26 = vld [vmem:[%s1866_s1 + $0x108] sm:$0xff] }
   0xf   :  { %456 = vmatpush.bf16.msra.mxu3 %v1325_v13  ;;  %v72_v54 = vpack.c.bf16 %v63_v43, %v62_v42  ;;  %v174_v2 = vunpack.c.l.b16 %v85_v59  ;;  %v179_v3 = vunpack.c.l.b16 %v88_v60  ;;  %v175_v4 = vunpack.c.h.b16 %v85_v59  ;;  %v1297_v12 = vld [vmem:[%s1866_s1] sm:$0xff]  ;;  %v1332_v13 = vld [vmem:[%s1866_s1 + $0x118] sm:$0xff]  ;;  %v508_v37 = vld [vmem:[%s1869_s3 + $0x28] sm:$0xff] }
  0x10   :  { %414 = vmatpush.bf16.msra.mxu0 %v1301_v16  ;;  %v87_v63 = vsel %vm81_vm11, %v39_v23, %v75_v55  ;;  %v180_v5 = vunpack.c.h.b16 %v88_v60  ;;  %v51_v11 = vunpack.c.l.bf16 %v41_v1  ;;  %v1305_v16 = vld [vmem:[%s1866_s1 + $0x40] sm:$0xff]  ;;  %v66_v20 = vmul.f32 0.20019531, %v46_v10  ;;  %v1331_v23 = vld [vmem:[%s1866_s1 + $0x110] sm:$0xff]  ;;  %v510_v33 = vld [vmem:[%s1869_s3 + $0x38] sm:$0xff] }
  0x11   :  { %428 = vmatpush.bf16.msra.mxu1 %v1309_v17  ;;  %v84_v62 = vsel %vm78_vm10, %v36_v22, %v72_v54  ;;  %v177_v9 = vunpack.c.l.b16 %v87_v63  ;;  %v178_v15 = vunpack.c.h.b16 %v87_v63  ;;  %v184_v17 = vpack.c.b16 %v179_v3, %v174_v2  ;;  %v507_v39 = vld [vmem:[%s1869_s3 + $0x20] sm:$0xff]  ;;  %v506_v41 = vld [vmem:[%s1869_s3 + $0x18] sm:$0xff]  ;;  %v505_v42 = vld [vmem:[%s1869_s3 + $0x10] sm:$0xff] }
  0x12   :  { %443 = vmatpush.bf16.msra.mxu2 %v1316_v28  ;;  %v172_v8 = vunpack.c.l.b16 %v84_v62  ;;  %v173_v14 = vunpack.c.h.b16 %v84_v62  ;;  %v185_v18 = vpack.c.b16 %v180_v5, %v175_v4  ;;  %v71_v21 = vmul.f32 0.20019531, %v51_v11  ;;  %v1375_v40 = vld [vmem:[%s1868_s2] ss:$0 sm:$0xff]  ;;  %v504_v45 = vld [vmem:[%s1869_s3 + $0x8] sm:$0xff] }
  0x13   :  { %457 = vmatpush.bf16.msra.mxu3 %v1324_v29  ;;  %vm56_vm12 = vcmp.ge.f32.partialorder %v46_v10, 0.0  ;;  %vm61_vm13 = vcmp.ge.f32.partialorder %v51_v11, 0.0  ;;  %v74_v24 = vpack.c.bf16 %v66_v20, %v66_v20  ;;  %v1329_v29 = vld [vmem:[%s1866_s1 + $0x100] sm:$0xff]  ;;  %vm501_vm1 = vcmask 1040384   ;;  %v1344_v20 = vld [vmem:[%s1870_s5 + $0x58] sm:$0xff] }
  0x14   :  { %415 = vmatpush.bf16.msra.mxu0 %v1300_v34  ;;  %v182_v19 = vpack.c.b16 %v177_v9, %v172_v8  ;;  %v183_v22 = vpack.c.b16 %v178_v15, %v173_v14  ;;  %v77_v25 = vpack.c.bf16 %v71_v21, %v71_v21  ;;  %vm80_vm14 = vmpackc.low %vm56_vm12, %vm56_vm12  ;;  %vm612_vm6 = vcmask 1046528  }
  0x15   :  { %429 = vmatpush.bf16.msra.mxu1 %v1308_v35  ;;  %vm83_vm15 = vmpackc.low %vm61_vm13, %vm61_vm13  ;;  %v86_v27 = vsel %vm80_vm14, %v38_v0, %v74_v24  ;;  %v509_v35 = vld [vmem:[%s1869_s3 + $0x30] sm:$0xff]  ;;  %vm953_vm10 = vcmask 1041409  }
  0x16   :  { %444 = vmatpush.bf16.msra.mxu2 %v1315_v48  ;;  %v89_v28 = vsel %vm83_vm15, %v41_v1, %v77_v25  ;;  %v176_v30 = vunpack.c.l.b16 %v86_v27  ;;  %v503_v48 = vld [vmem:[%s1869_s3] sm:$0xff]  ;;  %vm1018_vm15 = vcmask 64512  }
  0x17   :  { %458 = vmatpush.bf16.msra.mxu3 %v1323_v49  ;;  %v181_v31 = vunpack.c.l.b16 %v89_v28  ;;  %v1341_v28 = vld [vmem:[%s1870_s5 + $0x40] sm:$0xff] }
  0x18   :  { %416 = vmatpush.bf16.msra.mxu0 %v1299_v52 }
  0x19   :  { %430 = vmatpush.bf16.msra.mxu1 %v1307_v53  ;;  %v186_v32 = vpack.c.b16 %v181_v31, %v176_v30  ;;  %v1340_v30 = vld [vmem:[%s1870_s5 + $0x38] sm:$0xff] }
  0x1a   :  { %445 = vmatpush.bf16.msra.mxu2 %v1314_v56 }
  0x1b   :  { %459 = vmatpush.bf16.msra.mxu3 %v1322_v57 }
  0x1c   :  { %417 = vmatpush.bf16.msra.mxu0 %v1298_v58 }
  0x1d   :  { %431 = vmatpush.bf16.msra.mxu1 %v1306_v61 }
  0x1e   :  { %446 = vmatpush.bf16.msra.mxu2 %v1313_v6 }
  0x1f   :  { %460 = vmatpush.bf16.msra.mxu3 %v1321_v7 }
  0x20   :  { %418 = vmatpush.bf16.msra.mxu0 %v1297_v12 }
  0x21   :  { %432 = vmatpush.bf16.msra.mxu1 %v1305_v16  ;;  %447 = vmatmul.bf16.vlgmr.msra.gmra.mxu2 %v184_v17 }
  0x22   :  { %461 = vmatmul.bf16.vlgmr.msra.gmra.mxu3 %v185_v18  ;;  %738 = vmatpush.bf16.msrb.mxu2 %v1340_v30 }
  0x23   :  { %471 = vmatpush.bf16.msrb.mxu3 %v1332_v13  ;;  %419 = vmatmul.bf16.vlgmr.msra.gmra.mxu0 %v182_v19 }
  0x24   :  { %433 = vmatmul.bf16.vlgmr.msra.gmra.mxu1 %v183_v22 }
  0x25   :  { %522 = vmatpush.msrb.mxu1 %v510_v33 }
  0x27   :  { %472 = vmatpush.bf16.msrb.mxu3 %v1331_v23  ;;  %523 = vmatpush.msrb.mxu1 %v509_v35  ;;  %v1343_v23 = vld [vmem:[%s1870_s5 + $0x50] sm:$0xff]  ;;  %v1338_v35 = vld [vmem:[%s1870_s5 + $0x28] sm:$0xff] }
  0x29   :  { %524 = vmatpush.msrb.mxu1 %v508_v37 }
  0x2b   :  { %473 = vmatpush.bf16.msrb.mxu3 %v1330_v26  ;;  %525 = vmatpush.msrb.mxu1 %v507_v39  ;;  %v1342_v26 = vld [vmem:[%s1870_s5 + $0x48] sm:$0xff]  ;;  %v1337_v39 = vld [vmem:[%s1870_s5 + $0x20] sm:$0xff] }
  0x2d   :  { %526 = vmatpush.msrb.mxu1 %v506_v41 }
  0x2f   :  { %474 = vmatpush.bf16.msrb.mxu3 %v1329_v29  ;;  %527 = vmatpush.msrb.mxu1 %v505_v42 }
  0x31   :  { %528 = vmatpush.msrb.mxu1 %v504_v45  ;;  %v1336_v45 = vld [vmem:[%s1870_s5 + $0x18] sm:$0xff] }
  0x32   :  { %1195 = vmatmul.msk.bf16.vlgmr.msrb.gmra.mxu3 %vm407_vm0, %v186_v32  ;;  %v1339_v32 = vld [vmem:[%s1870_s5 + $0x30] sm:$0xff] }
  0x33   :  { %529 = vmatpush.msrb.mxu1 %v503_v48  ;;  %756 = vmatpush.bf16.msra.mxu3 %v1344_v20 }
  0x34   :  { %739 = vmatpush.bf16.msrb.mxu2 %v1339_v32 }
  0x37   :  { %757 = vmatpush.bf16.msra.mxu3 %v1343_v23  ;;  %v1354_v23 = vld [vmem:[%s1873_s7 + $0x48] sm:$0xff] }
  0x38   :  { %740 = vmatpush.bf16.msrb.mxu2 %v1338_v35  ;;  %v1347_v35 = vld [vmem:[%s1873_s7 + $0x10] sm:$0xff] }
  0x3b   :  { %758 = vmatpush.bf16.msra.mxu3 %v1342_v26  ;;  %v1351_v26 = vld [vmem:[%s1873_s7 + $0x30] sm:$0xff] }
  0x3c   :  { %741 = vmatpush.bf16.msrb.mxu2 %v1337_v39 }
  0x3f   :  { %759 = vmatpush.bf16.msra.mxu3 %v1341_v28  ;;  %v1376_v28 = vld [vmem:[%s1872_s6] ss:$0 sm:$0xff] }
  0x40   :  { %742 = vmatpush.bf16.msrb.mxu2 %v1336_v45 }
  0xa0   :  { %v420_v34 = vpop.f32.mrf.mxu0 }
  0xa1   :  { %v434_v38 = vpop.f32.mrf.mxu1  ;;  %v421_v44 = vadd.f32 %v1375_v40, %v420_v34 }
  0xa3   :  { %v435_v49 = vadd.f32 %v434_v38, %v421_v44  ;;  %v567_v38 = vlaneseq }
  0xa4   :  { %v448_v43 = vpop.f32.mrf.mxu2 }
  0xa5   :  { %v462_v36 = vpop.f32.mrf.mxu3  ;;  %v449_v52 = vadd.f32 %v448_v43, %v435_v49  ;;  %v568_v44 = vshrl.u32 %v567_v38, 7 }
  0xa7   :  { %v463_v56 = vadd.f32 %v462_v36, %v449_v52  ;;  %v569_v49 = vadd.s32 8, %v568_v44  ;;  %v574_v52 = vand.u32 7, %v568_v44 }
  0xa8   :  { %v422_v46 = vpop.f32.mrf.mxu0 }
  0xa9   :  { %v423_v50 = vadd.f32 %v1375_v40, %v422_v46  ;;  %v436_v51 = vpop.f32.mrf.mxu1  ;;  %v535_v40 = vld [vmem:[%s1871_s4] sm:$0x3]  ;;  %vm1722_vm5 = vcmp.ne.s32.totalorder %v574_v52, 7  ;;  %vm1747_vm8 = vcmp.ne.s32.totalorder %v574_v52, 0 }
  0xab   :  { %v437_v53 = vadd.f32 %v436_v51, %v423_v50  ;;  %v1335_v50 = vld [vmem:[%s1870_s5 + $0x10] sm:$0xff] }
  0xac   :  { %v450_v54 = vpop.f32.mrf.mxu2  ;;  %743 = vmatpush.bf16.msrb.mxu2 %v1335_v50 }
  0xad   :  { %v464_v47 = vpop.f32.mrf.mxu3  ;;  %v451_v57 = vadd.f32 %v450_v54, %v437_v53 }
  0xaf   :  { %v465_v59 = vadd.f32 %v464_v47, %v451_v57  ;;  %v1334_v57 = vld [vmem:[%s1870_s5 + $0x8] sm:$0xff] }
  0xb0   :  { %744 = vmatpush.bf16.msrb.mxu2 %v1334_v57 }
  0xb5   :  { %v476_v55 = vpop.f32.mrf.mxu3 }
  0xb6   :  { %v1664_v58 = vadd.f32 %v476_v55, %v463_v56  ;;  %v581_v56 = vand.u32 7, %v569_v49 }
  0xb8   :  { %v490_v61 = vmul.f32 %v1664_v58, %v1664_v58  ;;  %v481_v63 = vsel %vm407_vm0, %v1664_v58, 0.0  ;;  %vm1729_vm7 = vcmp.ne.s32.totalorder %v581_v56, 7  ;;  %vm1751_vm9 = vcmp.ne.s32.totalorder %v581_v56, 0 }
  0xba   :  { %v492_v3 = vsel %vm407_vm0, %v490_v61, 0.0 }
  0xbd   :  { %v478_v60 = vpop.f32.mrf.mxu3 }
  0xbe   :  { %v1668_v62 = vadd.f32 %v478_v60, %v465_v59 }
  0xc0   :  { %v482_v0 = vsel %vm407_vm0, %v1668_v62, 0.0  ;;  %v491_v1 = vmul.f32 %v1668_v62, %v1668_v62 }
  0xc1   :  { %v483_v2 = vadd.f32 %v482_v0, %v481_v63 }
  0xc2   :  { %v493_v4 = vsel %vm407_vm0, %v491_v1, 0.0 }
  0xc3   :  { %v484_v5 = vrot.slane %v483_v2, 4  ;;  %v494_v6 = vadd.f32 %v493_v4, %v492_v3 }
  0xc5   :  { %v485_v7 = vadd.f32 %v484_v5, %v483_v2  ;;  %v495_v8 = vrot.slane %v494_v6, 4 }
  0xc7   :  { %v486_v9 = vrot.slane %v485_v7, 2  ;;  %v496_v10 = vadd.f32 %v495_v8, %v494_v6  ;;  %v1333_v6 = vld [vmem:[%s1870_s5] sm:$0xff] }
  0xc8   :  { %745 = vmatpush.bf16.msrb.mxu2 %v1333_v6  ;;  %v946_v6 = vld [vmem:[%s1875_s9 + $0x18] sm:$0xff] }
  0xc9   :  { %v487_v11 = vadd.f32 %v486_v9, %v485_v7  ;;  %v497_v12 = vrot.slane %v496_v10, 2  ;;  %v943_v9 = vld [vmem:[%s1875_s9] sm:$0xff] }
  0xcb   :  { %v488_v13 = vrot.slane %v487_v11, 1  ;;  %v498_v14 = vadd.f32 %v497_v12, %v496_v10  ;;  %v1377_v10 = vld [vmem:[%s1874_s8] ss:$0 sm:$0xff]  ;;  %s1385_s8 = smov 40  }
  0xcd   :  { %v499_v15 = vrot.slane %v498_v14, 1  ;;  %v489_v16 = vadd.f32 %v488_v13, %v487_v11 }
  0xcf   :  { %v500_v17 = vadd.f32 %v499_v15, %v498_v14 }
  0xd1   :  { %v502_v18 = vsel %vm501_vm1, %v489_v16, %v500_v17 }
  0xd2   :  { %1196 = vmatmul.msk.f32.vlgmr.msrb.gmra.mxu1 %vm407_vm0, %v502_v18 }
 0x14f   :  { %v531_v19 = vpop.f32.mrf.mxu1 }
 0x150   :  { %v534_v21 = vmul.f32 0.0625, %v531_v19 }
 0x152   :  { %v536_v22 = vmul.f32 %v534_v21, %v534_v21 }
 0x154   :  { %v538_v24 = vrot.slane %v536_v22, 7  ;;  %v1355_v22 = vld [vmem:[%s1873_s7 + $0x50] sm:$0xff] }
 0x156   :  { %v540_v25 = vsub.f32 %v534_v21, %v538_v24  ;;  %v1353_v24 = vld [vmem:[%s1873_s7 + $0x40] sm:$0xff] }
 0x158   :  { %v541_v27 = vadd.f32 1e-05, %v540_v25  ;;  %v1352_v25 = vld [vmem:[%s1873_s7 + $0x38] sm:$0xff] }
 0x159   :  { %899 = vmatpush.bf16.msrb.mxu0 %v1352_v25 }
 0x15a   :  { %1378 = vrsqrt.f32 %v541_v27  ;;  %vm548_vm3 = vweird.f32 %v541_v27 }
 0x15d   :  { %900 = vmatpush.bf16.msrb.mxu0 %v1351_v26 }
 0x160   :  { %v1379_v29 = vpop.eup %1378 }
 0x161   :  { %v543_v31 = vmul.f32 %v1379_v29, %v541_v27  ;;  %vm549_vm2 = vweird.f32 %v1379_v29  ;;  %v1350_v27 = vld [vmem:[%s1873_s7 + $0x28] sm:$0xff] }
 0x162   :  { %vm550_vm4 = vmor %vm548_vm3, %vm549_vm2  ;;  %901 = vmatpush.bf16.msrb.mxu0 %v1350_v27  ;;  %vm1022_vm2 = vcmask 195584   ;;  %vm1024_vm3 = vcmask 261120  }
 0x163   :  { %v544_v33 = vmul.f32 %v1379_v29, %v543_v31 }
 0x165   :  { %v545_v34 = vmul.f32 0.5, %v544_v33  ;;  %v1348_v33 = vld [vmem:[%s1873_s7 + $0x18] sm:$0xff] }
 0x167   :  { %v546_v36 = vsub.f32 1.5, %v545_v34 }
 0x169   :  { %v547_v37 = vmul.f32 %v1379_v29, %v546_v36 }
 0x16b   :  { %v551_v41 = vsel %vm550_vm4, %v1379_v29, %v547_v37  ;;  %v1349_v29 = vld [vmem:[%s1873_s7 + $0x20] sm:$0xff]  ;;  %vm1026_vm4 = vcmask 326656  }
 0x16c   :  { %v553_v42 = vrot.slane %v551_v41, 1  ;;  %902 = vmatpush.bf16.msrb.mxu0 %v1349_v29  ;;  %v1346_v41 = vld [vmem:[%s1873_s7 + $0x8] sm:$0xff] }
 0x16e   :  { %v555_v43 = vmul.f32 %v553_v42, %v535_v40 }
 0x170   :  { %v556_v46 = vmul.f32 %v555_v43, %v534_v21  ;;  %v561_v48 = vperm.slane %v555_v43, 0  ;;  %v1356_v21 = vld [vmem:[%s1873_s7 + $0x58] sm:$0xff]  ;;  %903 = vmatpush.bf16.msrb.mxu0 %v1348_v33 }
 0x171   :  { %917 = vmatpush.bf16.msra.mxu1 %v1356_v21 }
 0x172   :  { %v558_v47 = vrot.slane %v556_v46, 7  ;;  %v562_v53 = vmul.f32 %v561_v48, %v1664_v58  ;;  %v563_v54 = vmul.f32 %v561_v48, %v1668_v62 }
 0x174   :  { %v560_v51 = vsub.f32 %v535_v40, %v558_v47  ;;  %904 = vmatpush.bf16.msrb.mxu0 %v1347_v35 }
 0x175   :  { %918 = vmatpush.bf16.msra.mxu1 %v1355_v22 }
 0x176   :  { %v564_v55 = vperm.slane %v560_v51, 1 }
 0x178   :  { %v1718_v59 = vadd.f32 %v564_v55, %v562_v53  ;;  %v1720_v60 = vadd.f32 %v564_v55, %v563_v54  ;;  %905 = vmatpush.bf16.msrb.mxu0 %v1346_v41  ;;  %v1345_v54 = vld [vmem:[%s1873_s7] sm:$0xff] }
 0x179   :  { %919 = vmatpush.bf16.msra.mxu1 %v1354_v23 }
 0x17a   :  { %v1365_v58 = vpack.i.bf16 %v1720_v60, %v1718_v59  ;;  %v613_v62 = vrot.slane %v1718_v59, 1  ;;  %v614_v0 = vrot.slane %v1720_v60, 1  ;;  %v600_v7 = vrot.slane %v1718_v59, 7 }
 0x17b   :  { %v601_v8 = vrot.slane %v1720_v60, 7 }
 0x17c   :  { %1366 = vrot.lane.b32.xlu0 %v1365_v58, %s1384_s30  ;;  %v615_v1 = vsel %vm612_vm6, %v613_v62, %v614_v0  ;;  %v618_v2 = vsel %vm612_vm6, %v614_v0, 0.0  ;;  %v605_v12 = vsel %vm501_vm1, 0.0, %v600_v7  ;;  %906 = vmatpush.bf16.msrb.mxu0 %v1345_v54 }
 0x17d   :  { %v623_v3 = vsel %vm1722_vm5, %v615_v1, 0.0  ;;  %v624_v4 = vsel %vm1729_vm7, %v618_v2, 0.0  ;;  %v602_v11 = vsel %vm501_vm1, %v600_v7, %v601_v8  ;;  %v610_v16 = vsel %vm1747_vm8, %v605_v12, 0.0  ;;  %920 = vmatpush.bf16.msra.mxu1 %v1353_v24  ;;  %v950_v2 = vld [vmem:[%s1875_s9 + $0x38] sm:$0xff]  ;;  %v945_v7 = vld [vmem:[%s1875_s9 + $0x10] sm:$0xff]  ;;  %v944_v8 = vld [vmem:[%s1875_s9 + $0x8] sm:$0xff] }
 0x17e   :  { %v634_v5 = vpack.c.bf16 %v624_v4, %v623_v3  ;;  %v611_v17 = vsel %vm1751_vm9, %v602_v11, 0.0  ;;  %965 = vmatpush.msrb.mxu3 %v950_v2  ;;  %v949_v3 = vld [vmem:[%s1875_s9 + $0x30] sm:$0xff]  ;;  %v948_v4 = vld [vmem:[%s1875_s9 + $0x28] sm:$0xff] }
 0x180   :  { %1245 = vmatmul.msk.bf16.vlgmr.msra.gmra.mxu3 %vm407_vm0, %v634_v5  ;;  %v947_v5 = vld [vmem:[%s1875_s9 + $0x20] sm:$0xff]  ;;  %s1386_s9 = smov 24  }
 0x181   :  { %966 = vmatpush.msrb.mxu3 %v949_v3 }
 0x183   :  { %967 = vmatpush.msrb.mxu3 %v948_v4 }
 0x185   :  { %968 = vmatpush.msrb.mxu3 %v947_v5 }
 0x187   :  { %969 = vmatpush.msrb.mxu3 %v946_v6 }
 0x189   :  { %970 = vmatpush.msrb.mxu3 %v945_v7 }
 0x18b   :  { %971 = vmatpush.msrb.mxu3 %v944_v8 }
 0x18d   :  { %972 = vmatpush.msrb.mxu3 %v943_v9 }
 0x1ee   :  { %v1367_v13 = vpop.permute.xlu0 %1366 }
 0x1ef   :  { %v1369_v14 = vunpack.i.h.bf16 %v1367_v13  ;;  %v1368_v15 = vunpack.i.l.bf16 %v1367_v13 }
 0x1f1   :  { %v631_v18 = vsel %vm407_vm0, %v610_v16, %v1368_v15  ;;  %v632_v19 = vsel %vm407_vm0, %v611_v17, %v1369_v14 }
 0x1f2   :  { %v633_v20 = vpack.c.bf16 %v632_v19, %v631_v18 }
 0x1f4   :  { %746 = vmatmul.bf16.vlgmr.msrb.gmra.mxu2 %v633_v20 }
 0x203   :  { %v761_v30 = vpop.f32.mrf.mxu3 }
 0x20b   :  { %v763_v38 = vpop.f32.mrf.mxu3 }
 0x277   :  { %v747_v31 = vpop.f32.mrf.mxu2 }
 0x278   :  { %v748_v32 = vadd.f32 %v1376_v28, %v747_v31 }
 0x27a   :  { %v762_v34 = vadd.f32 %v761_v30, %v748_v32 }
 0x27c   :  { %v766_v39 = vmax.f32 %v762_v34, 0.0 }
 0x27e   :  { %v770_v43 = vrot.slane %v766_v39, 7  ;;  %v778_v44 = vrot.slane %v766_v39, 1 }
 0x27f   :  { %v749_v36 = vpop.f32.mrf.mxu2 }
 0x280   :  { %v750_v37 = vadd.f32 %v1376_v28, %v749_v36  ;;  %v775_v55 = vsel %vm501_vm1, 0.0, %v770_v43 }
 0x281   :  { %v776_v61 = vsel %vm1747_vm8, %v775_v55, 0.0 }
 0x282   :  { %v764_v40 = vadd.f32 %v763_v38, %v750_v37 }
 0x284   :  { %v767_v42 = vmax.f32 %v764_v40, 0.0 }
 0x286   :  { %v771_v45 = vrot.slane %v767_v42, 7  ;;  %v779_v46 = vrot.slane %v767_v42, 1  ;;  %v1370_v47 = vpack.i.bf16 %v767_v42, %v766_v39 }
 0x288   :  { %v780_v48 = vsel %vm612_vm6, %v778_v44, %v779_v46  ;;  %v783_v49 = vsel %vm612_vm6, %v779_v46, 0.0  ;;  %1371 = vrot.lane.b32.xlu0 %v1370_v47, %s1384_s30  ;;  %v772_v50 = vsel %vm501_vm1, %v770_v43, %v771_v45  ;;  %vm1020_vm1 = vcmask 130048  }
 0x289   :  { %v784_v51 = vsel %vm1722_vm5, %v780_v48, 0.0  ;;  %v785_v52 = vsel %vm1729_vm7, %v783_v49, 0.0  ;;  %v777_v62 = vsel %vm1751_vm9, %v772_v50, 0.0  ;;  %vm1028_vm5 = vcmask 392192  }
 0x28a   :  { %v795_v53 = vpack.c.bf16 %v785_v52, %v784_v51  ;;  %vm1030_vm6 = vcmask 457728  }
 0x28c   :  { %1294 = vmatmul.msk.bf16.vlgmr.msra.gmra.mxu1 %vm407_vm0, %v795_v53 }
 0x2fa   :  { %v1372_v56 = vpop.permute.xlu0 %1371 }
 0x2fb   :  { %v1374_v57 = vunpack.i.h.bf16 %v1372_v56  ;;  %v1373_v58 = vunpack.i.l.bf16 %v1372_v56 }
 0x2fd   :  { %v792_v63 = vsel %vm407_vm0, %v776_v61, %v1373_v58  ;;  %v793_v0 = vsel %vm407_vm0, %v777_v62, %v1374_v57 }
 0x2fe   :  { %v794_v1 = vpack.c.bf16 %v793_v0, %v792_v63 }
 0x300   :  { %907 = vmatmul.bf16.vlgmr.msrb.gmra.mxu0 %v794_v1 }
 0x309   :  { %v922_v11 = vpop.f32.mrf.mxu1 }
 0x311   :  { %v924_v20 = vpop.f32.mrf.mxu1 }
 0x37d   :  { %v908_v12 = vpop.f32.mrf.mxu0 }
 0x37e   :  { %v909_v13 = vadd.f32 %v1377_v10, %v908_v12 }
 0x380   :  { %v923_v14 = vadd.f32 %v922_v11, %v909_v13 }
 0x382   :  { %v1846_v15 = vadd.f32 %v923_v14, %v1718_v59 }
 0x384   :  { %v929_v16 = vsel %vm407_vm0, %v1846_v15, 0.0 }
 0x385   :  { %v930_v17 = vrot.slane %v929_v16, 4  ;;  %v910_v18 = vpop.f32.mrf.mxu0 }
 0x386   :  { %v911_v19 = vadd.f32 %v1377_v10, %v910_v18 }
 0x387   :  { %v931_v21 = vadd.f32 %v930_v17, %v929_v16 }
 0x388   :  { %v925_v22 = vadd.f32 %v924_v20, %v911_v19 }
 0x389   :  { %v932_v24 = vrot.slane %v931_v21, 2 }
 0x38a   :  { %v1851_v23 = vadd.f32 %v925_v22, %v1720_v60 }
 0x38b   :  { %v933_v27 = vadd.f32 %v932_v24, %v931_v21 }
 0x38c   :  { %v936_v25 = vsel %vm407_vm0, %v1851_v23, 0.0 }
 0x38d   :  { %v937_v26 = vrot.slane %v936_v25, 4  ;;  %v934_v29 = vrot.slane %v933_v27, 1 }
 0x38f   :  { %v938_v59 = vadd.f32 %v937_v26, %v936_v25  ;;  %v935_v32 = vadd.f32 %v934_v29, %v933_v27 }
 0x391   :  { %v939_v28 = vrot.slane %v938_v59, 2 }
 0x393   :  { %v940_v30 = vadd.f32 %v939_v28, %v938_v59 }
 0x395   :  { %v941_v31 = vrot.slane %v940_v30, 1 }
 0x397   :  { %v942_v33 = vadd.f32 %v941_v31, %v940_v30 }
 0x399   :  { %v954_v34 = vsel %vm953_vm10, %v942_v33, %v935_v32 }
 0x39a   :  { %1295 = vmatmul.msk.f32.vlgmr.msrb.gmra.mxu3 %vm407_vm0, %v954_v34 }
 0x41d   :  { %v974_v35 = vpop.f32.mrf.mxu3 }
 0x41e   :  { %v1296_v60 = vmul.f32 -1.442695, %v974_v35 }
 0x420   :  { %1380 = vpow2.f32 %v1296_v60 }
 0x426   :  { %v1381_v36 = vpop.eup %1380 }
 0x427   :  { %v980_v37 = vadd.f32 1.0, %v1381_v36 }
 0x429   :  { %1382 = vrcp.f32 %v980_v37  ;;  %v992_v41 = vand.u32 2147483648, %v980_v37  ;;  %v990_v43 = vand.u32 2147483647, %v980_v37  ;;  %vm986_vm12 = vweird.f32 %v980_v37 }
 0x42b   :  { %v993_v45 = vor.u32 1.1754944e-38, %v992_v41  ;;  %vm991_vm14 = vcmp.eq.f32.partialorder %v990_v43, 8.507059e+37 }
 0x42f   :  { %v1383_v38 = vpop.eup %1382 }
 0x430   :  { %v982_v39 = vmul.f32 %v1383_v38, %v980_v37  ;;  %vm987_vm11 = vweird.f32 %v1383_v38 }
 0x431   :  { %vm988_vm13 = vmor %vm986_vm12, %vm987_vm11 }
 0x432   :  { %v983_v40 = vsub.f32 1.0, %v982_v39 }
 0x434   :  { %v984_v42 = vmul.f32 %v1383_v38, %v983_v40 }
 0x436   :  { %v985_v44 = vadd.f32 %v1383_v38, %v984_v42 }
 0x438   :  { %v989_v46 = vsel %vm988_vm13, %v1383_v38, %v985_v44 }
 0x439   :  { %v994_v47 = vsel %vm991_vm14, %v993_v45, %v989_v46 }
 0x43a   :  { %1009 = vrot.lane.b32.xlu0 %v994_v47, %s1385_s8  ;;  %1003 = vrot.lane.b32.xlu2 %v994_v47, %s1386_s9 }
 0x43b   :  { %997 = vrot.lane.b32.xlu1 %v994_v47, %s1387_s25 }
 0x442   :  { %1006 = vrot.lane.b32.xlu2 %v994_v47, %s1388_s26 }
 0x443   :  { %1000 = vrot.lane.b32.xlu1 %v994_v47, %s1389_s27 }
 0x44a   :  { %1015 = vrot.lane.b32.xlu2 %v994_v47, %s1390_s28 }
 0x44b   :  { %1012 = vrot.lane.b32.xlu1 %v994_v47, %s1391_s29 }
 0x494   :  { %v1004_v48 = vpop.permute.xlu2 %1003 }
 0x49c   :  { %v1007_v50 = vpop.permute.xlu2 %1006 }
 0x4a4   :  { %v1016_v61 = vpop.permute.xlu2 %1015 }
 0x4ac   :  { %v1010_v56 = vpop.permute.xlu0 %1009 }
 0x4ad   :  { %v998_v49 = vpop.permute.xlu1 %997 }
 0x4ae   :  { %v1019_v51 = vsel %vm1018_vm15, %v994_v47, %v998_v49 }
 0x4b5   :  { %v1001_v52 = vpop.permute.xlu1 %1000 }
 0x4b6   :  { %v1021_v53 = vsel %vm1020_vm1, %v1019_v51, %v1001_v52 }
 0x4b7   :  { %v1023_v54 = vsel %vm1022_vm2, %v1021_v53, %v1004_v48 }
 0x4b8   :  { %v1025_v55 = vsel %vm1024_vm3, %v1023_v54, %v1007_v50 }
 0x4b9   :  { %v1027_v57 = vsel %vm1026_vm4, %v1025_v55, %v1010_v56 }
 0x4bd   :  { %v1013_v58 = vpop.permute.xlu1 %1012 }
 0x4be   :  { %v1029_v62 = vsel %vm1028_vm5, %v1027_v57, %v1013_v58 }
 0x4bf   :  { %v1031_v63 = vsel %vm1030_vm6, %v1029_v62, %v1016_v61 }
 0x4c0   :  { %v1033_v0 = vrot.slane %v1031_v63, 1  ;;  %v1035_v1 = vadd.f32 1.0, %v1031_v63 }
 0x4c2   :  { %v1036_v2 = vadd.f32 1.0, %v1033_v0  ;;  %v1039_v3 = vperm.slane %v1035_v1, 0 }
 0x4c4   :  { %v1040_v4 = vperm.slane %v1036_v2, 0  ;;  %v1043_v5 = vmul.f32 %v1039_v3, %v1846_v15 }
 0x4c6   :  { %v1044_v6 = vmul.f32 %v1040_v4, %v1851_v23  ;;  %1045 = vst.msk [vmem:[%s1876_s10] sm:$0xff] %vm407_vm0, %v1043_v5 }
 0x4c8   :  { %1046 = vst.msk [vmem:[%s1876_s10 + $0x8] sm:$0xff] %vm407_vm0, %v1044_v6 }

// kernel: unet_encode.5
= control target key start
LH: loop header
LB: loop body
LE: loop exit
PB: predicated region body
PF: predicated region fallthrough
CT: control target
= control target key end

     0   :  { %vm227_vm2 = vcmask 523264   ;;  %vm285_vm6 = vcmask 1040384   ;;  %vm374_vm10 = vcmask 1046528   ;;  %s1011_s11 = smov 64   ;;  %vm663_vm13 = vcmask 519168   ;;  %s1014_s25 = smov 32   ;;  %s1316_s1 = inlined_call_operand.vmem [shape: bf16[320,64], index: 1, kind: input, shape index: {}]   ;;  %s1317_s0 = inlined_call_operand.vmem [shape: bf16[8,320], index: 0, kind: input, shape index: {}]   ;;  %s1318_s2 = inlined_call_operand.vmem [shape: f32[1,64], index: 2, kind: input, shape index: {}]   ;;  %s1319_s3 = inlined_call_operand.vmem [shape: f32[64,64], index: 3, kind: input, shape index: {}]   ;;  %s1320_s5 = inlined_call_operand.vmem [shape: bf16[192,64], index: 5, kind: input, shape index: {}]   ;;  %s1321_s4 = inlined_call_operand.vmem [shape: f32[2,64], index: 4, kind: input, shape index: {}]   ;;  %s1322_s6 = inlined_call_operand.vmem [shape: f32[1,64], index: 6, kind: input, shape index: {}]   ;;  %s1323_s7 = inlined_call_operand.vmem [shape: bf16[192,64], index: 7, kind: input, shape index: {}]   ;;  %s1324_s8 = inlined_call_operand.vmem [shape: f32[1,64], index: 8, kind: input, shape index: {}]   ;;  %s1325_s9 = inlined_call_operand.vmem [shape: f32[64,16], index: 9, kind: input, shape index: {}]   ;;  %s1326_s10 = inlined_call_operand.vmem [shape: f32[8,64], index: 10, kind: output, shape index: {}]  }
   0x1   :  { %v961_v0 = vld [vmem:[%s1316_s1 + $0x38] sm:$0xff]  ;;  %v960_v3 = vld [vmem:[%s1316_s1 + $0x30] sm:$0xff]  ;;  %v37_v6 = vld [vmem:[%s1317_s0 + $0x8] sm:$0xf]  ;;  %vm688_vm14 = vcmask 1041409  }
   0x2   :  { %v969_v1 = vld [vmem:[%s1316_s1 + $0x78] sm:$0xff]  ;;  %231 = vmatpush.bf16.msra.mxu0 %v961_v0  ;;  %v968_v4 = vld [vmem:[%s1316_s1 + $0x70] sm:$0xff]  ;;  %v959_v7 = vld [vmem:[%s1316_s1 + $0x28] sm:$0xff]  ;;  %v40_v9 = vunpack.c.l.bf16 %v37_v6 }
   0x3   :  { %v973_v2 = vld [vmem:[%s1316_s1 + $0x98] sm:$0xff]  ;;  %244 = vmatpush.bf16.msra.mxu1 %v969_v1  ;;  %v972_v5 = vld [vmem:[%s1316_s1 + $0x90] sm:$0xff]  ;;  %v967_v8 = vld [vmem:[%s1316_s1 + $0x68] sm:$0xff] }
   0x4   :  { %261 = vmatpush.bf16.msra.mxu2 %v973_v2  ;;  %v971_v10 = vld [vmem:[%s1316_s1 + $0x88] sm:$0xff]  ;;  %v36_v11 = vld [vmem:[%s1317_s0] sm:$0xff]  ;;  %vm43_vm0 = vcmp.ge.f32.partialorder %v40_v9, 0.0  ;;  %v46_v12 = vmul.f32 0.20019531, %v40_v9  ;;  %v957_v21 = vld [vmem:[%s1316_s1 + $0x18] sm:$0xff] }
   0x5   :  { %vm50_vm1 = vmpackc.low %vm43_vm0, %vm43_vm0  ;;  %v958_v13 = vld [vmem:[%s1316_s1 + $0x20] sm:$0xff]  ;;  %v38_v16 = vunpack.c.l.bf16 %v36_v11  ;;  %v39_v17 = vunpack.c.h.bf16 %v36_v11  ;;  %v965_v22 = vld [vmem:[%s1316_s1 + $0x58] sm:$0xff] }
   0x6   :  { %232 = vmatpush.bf16.msra.mxu0 %v960_v3  ;;  %v966_v14 = vld [vmem:[%s1316_s1 + $0x60] sm:$0xff]  ;;  %v48_v15 = vpack.c.bf16 %v46_v12, %v46_v12  ;;  %v956_v26 = vld [vmem:[%s1316_s1 + $0x10] sm:$0xff]  ;;  %v955_v29 = vld [vmem:[%s1316_s1 + $0x8] sm:$0xff] }
   0x7   :  { %245 = vmatpush.bf16.msra.mxu1 %v968_v4  ;;  %v970_v18 = vld [vmem:[%s1316_s1 + $0x80] sm:$0xff]  ;;  %v44_v23 = vmul.f32 0.20019531, %v38_v16  ;;  %v45_v24 = vmul.f32 0.20019531, %v39_v17  ;;  %vm41_vm3 = vcmp.ge.f32.partialorder %v38_v16, 0.0  ;;  %vm42_vm4 = vcmp.ge.f32.partialorder %v39_v17, 0.0  ;;  %v964_v27 = vld [vmem:[%s1316_s1 + $0x50] sm:$0xff] }
   0x8   :  { %262 = vmatpush.bf16.msra.mxu2 %v972_v5  ;;  %v52_v19 = vsel %vm50_vm1, %v37_v6, %v48_v15  ;;  %vm49_vm5 = vmpackc.low %vm42_vm4, %vm41_vm3  ;;  %v963_v30 = vld [vmem:[%s1316_s1 + $0x48] sm:$0xff]  ;;  %v954_v34 = vld [vmem:[%s1316_s1] sm:$0xff]  ;;  %vm741_vm4 = vcmask 130048  }
   0x9   :  { %v101_v20 = vunpack.c.l.b16 %v52_v19  ;;  %v47_v28 = vpack.c.bf16 %v45_v24, %v44_v23  ;;  %v962_v35 = vld [vmem:[%s1316_s1 + $0x40] sm:$0xff]  ;;  %v294_v38 = vld [vmem:[%s1319_s3 + $0x38] sm:$0xff]  ;;  %v293_v39 = vld [vmem:[%s1319_s3 + $0x30] sm:$0xff] }
   0xa   :  { %233 = vmatpush.bf16.msra.mxu0 %v959_v7  ;;  %306 = vmatpush.msra.mxu3 %v294_v38  ;;  %v292_v40 = vld [vmem:[%s1319_s3 + $0x28] sm:$0xff]  ;;  %v291_v41 = vld [vmem:[%s1319_s3 + $0x20] sm:$0xff]  ;;  %v290_v42 = vld [vmem:[%s1319_s3 + $0x18] sm:$0xff] }
   0xb   :  { %246 = vmatpush.bf16.msra.mxu1 %v967_v8  ;;  %v104_v25 = vpack.c.b16 %v101_v20, %v101_v20  ;;  %v51_v31 = vsel %vm49_vm5, %v36_v11, %v47_v28  ;;  %v289_v43 = vld [vmem:[%s1319_s3 + $0x10] sm:$0xff]  ;;  %v288_v44 = vld [vmem:[%s1319_s3 + $0x8] sm:$0xff]  ;;  %v287_v45 = vld [vmem:[%s1319_s3] sm:$0xff]  ;;  %vm743_vm5 = vcmask 261120  }
   0xc   :  { %263 = vmatpush.bf16.msra.mxu2 %v971_v10  ;;  %v99_v32 = vunpack.c.l.b16 %v51_v31  ;;  %v100_v33 = vunpack.c.h.b16 %v51_v31  ;;  %307 = vmatpush.msra.mxu3 %v293_v39  ;;  %v1002_v47 = vld [vmem:[%s1318_s2] ss:$0 sm:$0xff]  ;;  %v985_v9 = vld [vmem:[%s1320_s5 + $0x58] sm:$0xff]  ;;  %v984_v12 = vld [vmem:[%s1320_s5 + $0x50] sm:$0xff] }
   0xd   :  { %v983_v15 = vld [vmem:[%s1320_s5 + $0x48] sm:$0xff]  ;;  %v982_v17 = vld [vmem:[%s1320_s5 + $0x40] sm:$0xff]  ;;  %v981_v19 = vld [vmem:[%s1320_s5 + $0x38] sm:$0xff] }
   0xe   :  { %234 = vmatpush.bf16.msra.mxu0 %v958_v13  ;;  %v102_v36 = vpack.c.b16 %v99_v32, %v99_v32  ;;  %v103_v37 = vpack.c.b16 %v100_v33, %v100_v33  ;;  %308 = vmatpush.msra.mxu3 %v292_v40  ;;  %v979_v24 = vld [vmem:[%s1320_s5 + $0x28] sm:$0xff]  ;;  %v319_v28 = vld [vmem:[%s1321_s4] sm:$0x3]  ;;  %v349_v32 = vlaneseq  ;;  %v977_v33 = vld [vmem:[%s1320_s5 + $0x18] sm:$0xff] }
   0xf   :  { %247 = vmatpush.bf16.msra.mxu1 %v966_v14  ;;  %v976_v38 = vld [vmem:[%s1320_s5 + $0x10] sm:$0xff] }
  0x10   :  { %264 = vmatpush.bf16.msra.mxu2 %v970_v18  ;;  %309 = vmatpush.msra.mxu3 %v291_v41 }
  0x12   :  { %235 = vmatpush.bf16.msra.mxu0 %v957_v21  ;;  %310 = vmatpush.msra.mxu3 %v290_v42  ;;  %v980_v21 = vld [vmem:[%s1320_s5 + $0x30] sm:$0xff] }
  0x13   :  { %248 = vmatpush.bf16.msra.mxu1 %v965_v22  ;;  %852 = vmatmul.msk.bf16.vlgmr.msra.gmra.mxu2 %vm227_vm2, %v104_v25 }
  0x14   :  { %311 = vmatpush.msra.mxu3 %v289_v43  ;;  %488 = vmatpush.bf16.msrb.mxu2 %v981_v19  ;;  %v975_v43 = vld [vmem:[%s1320_s5 + $0x8] sm:$0xff] }
  0x16   :  { %236 = vmatpush.bf16.msra.mxu0 %v956_v26  ;;  %312 = vmatpush.msra.mxu3 %v288_v44 }
  0x17   :  { %249 = vmatpush.bf16.msra.mxu1 %v964_v27  ;;  %v978_v27 = vld [vmem:[%s1320_s5 + $0x20] sm:$0xff] }
  0x18   :  { %313 = vmatpush.msra.mxu3 %v287_v45  ;;  %489 = vmatpush.bf16.msrb.mxu2 %v980_v21 }
  0x1a   :  { %237 = vmatpush.bf16.msra.mxu0 %v955_v29  ;;  %505 = vmatpush.bf16.msrb.mxu3 %v985_v9 }
  0x1b   :  { %250 = vmatpush.bf16.msra.mxu1 %v963_v30 }
  0x1c   :  { %490 = vmatpush.bf16.msrb.mxu2 %v979_v24 }
  0x1e   :  { %238 = vmatpush.bf16.msra.mxu0 %v954_v34  ;;  %506 = vmatpush.bf16.msrb.mxu3 %v984_v12 }
  0x1f   :  { %251 = vmatpush.bf16.msra.mxu1 %v962_v35 }
  0x20   :  { %491 = vmatpush.bf16.msrb.mxu2 %v978_v27  ;;  %v684_v27 = vld [vmem:[%s1325_s9 + $0x30] sm:$0xff] }
  0x21   :  { %239 = vmatmul.bf16.vlgmr.msra.gmra.mxu0 %v102_v36 }
  0x22   :  { %252 = vmatmul.bf16.vlgmr.msra.gmra.mxu1 %v103_v37  ;;  %507 = vmatpush.bf16.msrb.mxu3 %v983_v15  ;;  %v350_v37 = vshrl.u32 %v349_v32, 7  ;;  %v679_v32 = vld [vmem:[%s1325_s9 + $0x8] sm:$0xff] }
  0x24   :  { %492 = vmatpush.bf16.msrb.mxu2 %v977_v33  ;;  %v355_v42 = vand.u32 3, %v350_v37  ;;  %v678_v33 = vld [vmem:[%s1325_s9] sm:$0xff] }
  0x26   :  { %508 = vmatpush.bf16.msrb.mxu3 %v982_v17  ;;  %vm1214_vm11 = vcmp.ne.s32.totalorder %v355_v42, 3  ;;  %vm1227_vm12 = vcmp.ne.s32.totalorder %v355_v42, 0  ;;  %v986_v17 = vld [vmem:[%s1323_s7] sm:$0xff] }
  0x28   :  { %493 = vmatpush.bf16.msrb.mxu2 %v976_v38 }
  0x2c   :  { %494 = vmatpush.bf16.msrb.mxu2 %v975_v43 }
  0x96   :  { %v266_v46 = vpop.f32.mrf.mxu2 }
  0x9e   :  { %v240_v48 = vpop.f32.mrf.mxu0  ;;  %v268_v51 = vpop.f32.mrf.mxu2 }
  0x9f   :  { %v253_v49 = vpop.f32.mrf.mxu1  ;;  %v241_v50 = vadd.f32 %v1002_v47, %v240_v48 }
  0xa1   :  { %v254_v52 = vadd.f32 %v253_v49, %v241_v50  ;;  %v974_v50 = vld [vmem:[%s1320_s5] sm:$0xff] }
  0xa2   :  { %495 = vmatpush.bf16.msrb.mxu2 %v974_v50 }
  0xa3   :  { %v1164_v53 = vadd.f32 %v266_v46, %v254_v52 }
  0xa5   :  { %v270_v54 = vsel %vm227_vm2, %v1164_v53, 0.0  ;;  %v277_v55 = vmul.f32 %v1164_v53, %v1164_v53 }
  0xa6   :  { %v271_v56 = vrot.slane %v270_v54, 4  ;;  %v242_v57 = vpop.f32.mrf.mxu0 }
  0xa7   :  { %v255_v58 = vpop.f32.mrf.mxu1  ;;  %v278_v59 = vsel %vm227_vm2, %v277_v55, 0.0 }
  0xa8   :  { %v272_v60 = vadd.f32 %v271_v56, %v270_v54  ;;  %v279_v61 = vrot.slane %v278_v59, 4  ;;  %v997_v54 = vld [vmem:[%s1323_s7 + $0x58] sm:$0xff] }
  0xa9   :  { %650 = vmatpush.bf16.msrb.mxu1 %v997_v54 }
  0xaa   :  { %v273_v62 = vrot.slane %v272_v60, 2  ;;  %v280_v63 = vadd.f32 %v279_v61, %v278_v59  ;;  %v996_v61 = vld [vmem:[%s1323_s7 + $0x50] sm:$0xff] }
  0xac   :  { %v274_v0 = vadd.f32 %v273_v62, %v272_v60  ;;  %v281_v1 = vrot.slane %v280_v63, 2  ;;  %v995_v62 = vld [vmem:[%s1323_s7 + $0x48] sm:$0xff] }
  0xad   :  { %651 = vmatpush.bf16.msrb.mxu1 %v996_v61 }
  0xae   :  { %v275_v2 = vrot.slane %v274_v0, 1  ;;  %v282_v3 = vadd.f32 %v281_v1, %v280_v63  ;;  %v994_v63 = vld [vmem:[%s1323_s7 + $0x40] sm:$0xff]  ;;  %v992_v1 = vld [vmem:[%s1323_s7 + $0x30] sm:$0xff] }
  0xb0   :  { %v283_v4 = vrot.slane %v282_v3, 1  ;;  %v276_v5 = vadd.f32 %v275_v2, %v274_v0  ;;  %v993_v0 = vld [vmem:[%s1323_s7 + $0x38] sm:$0xff]  ;;  %v991_v2 = vld [vmem:[%s1323_s7 + $0x28] sm:$0xff] }
  0xb1   :  { %652 = vmatpush.bf16.msrb.mxu1 %v995_v62  ;;  %633 = vmatpush.bf16.msrb.mxu0 %v993_v0 }
  0xb2   :  { %v284_v6 = vadd.f32 %v283_v4, %v282_v3  ;;  %v990_v3 = vld [vmem:[%s1323_s7 + $0x20] sm:$0xff]  ;;  %v989_v4 = vld [vmem:[%s1323_s7 + $0x18] sm:$0xff] }
  0xb4   :  { %v286_v7 = vsel %vm285_vm6, %v276_v5, %v284_v6  ;;  %v1003_v5 = vld [vmem:[%s1322_s6] ss:$0 sm:$0xff]  ;;  %v988_v6 = vld [vmem:[%s1323_s7 + $0x10] sm:$0xff] }
  0xb5   :  { %853 = vmatmul.msk.f32.vlgmr.msra.gmra.mxu3 %vm227_vm2, %v286_v7  ;;  %653 = vmatpush.bf16.msrb.mxu1 %v994_v63 }
  0xb6   :  { %634 = vmatpush.bf16.msrb.mxu0 %v992_v1 }
  0xba   :  { %635 = vmatpush.bf16.msrb.mxu0 %v991_v2 }
  0xbe   :  { %636 = vmatpush.bf16.msrb.mxu0 %v990_v3 }
  0xc2   :  { %637 = vmatpush.bf16.msrb.mxu0 %v989_v4 }
  0xc6   :  { %638 = vmatpush.bf16.msrb.mxu0 %v988_v6 }
 0x138   :  { %v315_v8 = vpop.f32.mrf.mxu3 }
 0x139   :  { %v318_v10 = vmul.f32 0.125, %v315_v8 }
 0x13b   :  { %v320_v11 = vmul.f32 %v318_v10, %v318_v10 }
 0x13d   :  { %v322_v13 = vrot.slane %v320_v11, 7 }
 0x13f   :  { %v324_v14 = vsub.f32 %v318_v10, %v322_v13 }
 0x141   :  { %v325_v16 = vadd.f32 1e-05, %v324_v14 }
 0x143   :  { %1005 = vrsqrt.f32 %v325_v16  ;;  %vm332_vm8 = vweird.f32 %v325_v16 }
 0x149   :  { %v1006_v18 = vpop.eup %1005 }
 0x14a   :  { %v327_v20 = vmul.f32 %v1006_v18, %v325_v16  ;;  %vm333_vm7 = vweird.f32 %v1006_v18 }
 0x14b   :  { %vm334_vm9 = vmor %vm332_vm8, %vm333_vm7 }
 0x14c   :  { %v328_v22 = vmul.f32 %v1006_v18, %v327_v20 }
 0x14e   :  { %v329_v23 = vmul.f32 0.5, %v328_v22 }
 0x150   :  { %v330_v25 = vsub.f32 1.5, %v329_v23 }
 0x152   :  { %v331_v26 = vmul.f32 %v1006_v18, %v330_v25 }
 0x154   :  { %v335_v29 = vsel %vm334_vm9, %v1006_v18, %v331_v26  ;;  %v685_v26 = vld [vmem:[%s1325_s9 + $0x38] sm:$0xff] }
 0x155   :  { %v337_v30 = vrot.slane %v335_v29, 1  ;;  %700 = vmatpush.msra.mxu3 %v685_v26  ;;  %v682_v29 = vld [vmem:[%s1325_s9 + $0x20] sm:$0xff] }
 0x157   :  { %v339_v31 = vmul.f32 %v337_v30, %v319_v28  ;;  %701 = vmatpush.msra.mxu3 %v684_v27  ;;  %v681_v30 = vld [vmem:[%s1325_s9 + $0x18] sm:$0xff] }
 0x159   :  { %v340_v34 = vmul.f32 %v339_v31, %v318_v10  ;;  %v345_v36 = vperm.slane %v339_v31, 0  ;;  %v987_v10 = vld [vmem:[%s1323_s7 + $0x8] sm:$0xff]  ;;  %v680_v31 = vld [vmem:[%s1325_s9 + $0x10] sm:$0xff] }
 0x15a   :  { %639 = vmatpush.bf16.msrb.mxu0 %v987_v10 }
 0x15b   :  { %v342_v35 = vrot.slane %v340_v34, 7  ;;  %v346_v41 = vmul.f32 %v345_v36, %v1164_v53  ;;  %v1004_v34 = vld [vmem:[%s1324_s8] ss:$0 sm:$0xff]  ;;  %s1012_s8 = smov 48  }
 0x15d   :  { %v344_v39 = vsub.f32 %v319_v28, %v342_v35  ;;  %v683_v28 = vld [vmem:[%s1325_s9 + $0x28] sm:$0xff]  ;;  %s1013_s9 = smov 16  }
 0x15e   :  { %640 = vmatpush.bf16.msrb.mxu0 %v986_v17  ;;  %702 = vmatpush.msra.mxu3 %v683_v28 }
 0x15f   :  { %v347_v40 = vperm.slane %v344_v39, 1 }
 0x160   :  { %703 = vmatpush.msra.mxu3 %v682_v29 }
 0x161   :  { %v1210_v44 = vadd.f32 %v347_v40, %v346_v41 }
 0x162   :  { %704 = vmatpush.msra.mxu3 %v681_v30 }
 0x163   :  { %379 = vrot.lane.b32.xlu0 %v1210_v44, %s1011_s11  ;;  %v372_v46 = vrot.slane %v1210_v44, 1  ;;  %v366_v51 = vrot.slane %v1210_v44, 7 }
 0x164   :  { %705 = vmatpush.msra.mxu3 %v680_v31 }
 0x165   :  { %v375_v47 = vsel %vm374_vm10, %v372_v46, 0.0  ;;  %v368_v53 = vsel %vm285_vm6, 0.0, %v366_v51 }
 0x166   :  { %v378_v48 = vsel %vm1214_vm11, %v375_v47, 0.0  ;;  %v371_v56 = vsel %vm1227_vm12, %v368_v53, 0.0  ;;  %706 = vmatpush.msra.mxu3 %v679_v32 }
 0x167   :  { %v384_v49 = vpack.c.bf16 %v378_v48, %v378_v48 }
 0x168   :  { %707 = vmatpush.msra.mxu3 %v678_v33 }
 0x169   :  { %902 = vmatmul.msk.bf16.vlgmr.msrb.gmra.mxu3 %vm227_vm2, %v384_v49 }
 0x1d5   :  { %v380_v55 = vpop.permute.xlu0 %379 }
 0x1d6   :  { %v382_v57 = vsel %vm227_vm2, %v371_v56, %v380_v55 }
 0x1d7   :  { %v383_v58 = vpack.c.bf16 %v382_v57, %v382_v57 }
 0x1d9   :  { %496 = vmatmul.bf16.vlgmr.msrb.gmra.mxu2 %v383_v58 }
 0x1ec   :  { %v510_v59 = vpop.f32.mrf.mxu3 }
 0x1f4   :  { %v512_v60 = vpop.f32.mrf.mxu3 }
 0x25c   :  { %v497_v7 = vpop.f32.mrf.mxu2 }
 0x25d   :  { %v498_v8 = vadd.f32 %v1003_v5, %v497_v7 }
 0x25f   :  { %v511_v9 = vadd.f32 %v510_v59, %v498_v8 }
 0x261   :  { %v514_v11 = vmax.f32 %v511_v9, 0.0 }
 0x263   :  { %v520_v12 = vrot.slane %v514_v11, 1  ;;  %524 = vrot.lane.b32.xlu0 %v514_v11, %s1011_s11  ;;  %v516_v18 = vrot.slane %v514_v11, 7 }
 0x264   :  { %v499_v13 = vpop.f32.mrf.mxu2 }
 0x265   :  { %v522_v14 = vsel %vm374_vm10, %v520_v12, 0.0  ;;  %v518_v19 = vsel %vm285_vm6, 0.0, %v516_v18  ;;  %vm745_vm6 = vcmask 392192  }
 0x266   :  { %v523_v15 = vsel %vm1214_vm11, %v522_v14, 0.0  ;;  %v519_v21 = vsel %vm1227_vm12, %v518_v19, 0.0 }
 0x267   :  { %v529_v16 = vpack.c.bf16 %v523_v15, %v523_v15 }
 0x269   :  { %951 = vmatmul.msk.bf16.vlgmr.msrb.gmra.mxu1 %vm227_vm2, %v529_v16 }
 0x2d5   :  { %v525_v20 = vpop.permute.xlu0 %524 }
 0x2d6   :  { %v527_v22 = vsel %vm227_vm2, %v519_v21, %v525_v20 }
 0x2d7   :  { %v528_v23 = vpack.c.bf16 %v527_v22, %v527_v22 }
 0x2d9   :  { %641 = vmatmul.bf16.vlgmr.msrb.gmra.mxu0 %v528_v23 }
 0x2e6   :  { %v655_v24 = vpop.f32.mrf.mxu1 }
 0x2ee   :  { %v657_v25 = vpop.f32.mrf.mxu1 }
 0x356   :  { %v642_v35 = vpop.f32.mrf.mxu0 }
 0x357   :  { %v643_v36 = vadd.f32 %v1004_v34, %v642_v35 }
 0x359   :  { %v656_v37 = vadd.f32 %v655_v24, %v643_v36 }
 0x35b   :  { %v659_v38 = vadd.f32 %v656_v37, %v1210_v44 }
 0x35d   :  { %v661_v39 = vrot.slane %v659_v38, 4  ;;  %v664_v40 = vsel %vm663_vm13, %v659_v38, 0.0 }
 0x35e   :  { %v665_v41 = vrot.slane %v664_v40, 4  ;;  %v644_v42 = vpop.f32.mrf.mxu0 }
 0x35f   :  { %v671_v43 = vsel %vm663_vm13, %v661_v39, 0.0 }
 0x360   :  { %v666_v45 = vadd.f32 %v665_v41, %v664_v40  ;;  %v672_v46 = vrot.slane %v671_v43, 4 }
 0x362   :  { %v667_v47 = vrot.slane %v666_v45, 2  ;;  %v673_v48 = vadd.f32 %v672_v46, %v671_v43 }
 0x364   :  { %v668_v49 = vadd.f32 %v667_v47, %v666_v45  ;;  %v674_v50 = vrot.slane %v673_v48, 2 }
 0x366   :  { %v669_v51 = vrot.slane %v668_v49, 1  ;;  %v675_v52 = vadd.f32 %v674_v50, %v673_v48 }
 0x368   :  { %v676_v53 = vrot.slane %v675_v52, 1  ;;  %v670_v54 = vadd.f32 %v669_v51, %v668_v49 }
 0x36a   :  { %v677_v55 = vadd.f32 %v676_v53, %v675_v52 }
 0x36c   :  { %v689_v56 = vsel %vm688_vm14, %v677_v55, %v670_v54 }
 0x36d   :  { %952 = vmatmul.msk.f32.vlgmr.msra.gmra.mxu3 %vm227_vm2, %v689_v56 }
 0x3f0   :  { %v709_v44 = vpop.f32.mrf.mxu3 }
 0x3f1   :  { %v953_v57 = vmul.f32 -1.442695, %v709_v44 }
 0x3f3   :  { %1007 = vpow2.f32 %v953_v57 }
 0x3f9   :  { %v1008_v58 = vpop.eup %1007 }
 0x3fa   :  { %v715_v59 = vadd.f32 1.0, %v1008_v58 }
 0x3fc   :  { %1009 = vrcp.f32 %v715_v59  ;;  %v727_v63 = vand.u32 2147483648, %v715_v59  ;;  %v725_v1 = vand.u32 2147483647, %v715_v59  ;;  %vm721_vm0 = vweird.f32 %v715_v59 }
 0x3fe   :  { %v728_v3 = vor.u32 1.1754944e-38, %v727_v63  ;;  %vm726_vm3 = vcmp.eq.f32.partialorder %v725_v1, 8.507059e+37 }
 0x402   :  { %v1010_v60 = vpop.eup %1009 }
 0x403   :  { %v717_v61 = vmul.f32 %v1010_v60, %v715_v59  ;;  %vm722_vm15 = vweird.f32 %v1010_v60 }
 0x404   :  { %vm723_vm1 = vmor %vm721_vm0, %vm722_vm15 }
 0x405   :  { %v718_v62 = vsub.f32 1.0, %v717_v61 }
 0x407   :  { %v719_v0 = vmul.f32 %v1010_v60, %v718_v62 }
 0x409   :  { %v720_v2 = vadd.f32 %v1010_v60, %v719_v0 }
 0x40b   :  { %v724_v4 = vsel %vm723_vm1, %v1010_v60, %v720_v2 }
 0x40c   :  { %v729_v5 = vsel %vm726_vm3, %v728_v3, %v724_v4 }
 0x40d   :  { %738 = vrot.lane.b32.xlu2 %v729_v5, %s1012_s8  ;;  %732 = vrot.lane.b32.xlu1 %v729_v5, %s1013_s9 }
 0x415   :  { %735 = vrot.lane.b32.xlu1 %v729_v5, %s1014_s25 }
 0x467   :  { %v739_v9 = vpop.permute.xlu2 %738 }
 0x47f   :  { %v733_v6 = vpop.permute.xlu1 %732 }
 0x480   :  { %v742_v7 = vsel %vm741_vm4, %v729_v5, %v733_v6 }
 0x487   :  { %v736_v8 = vpop.permute.xlu1 %735 }
 0x488   :  { %v744_v10 = vsel %vm743_vm5, %v742_v7, %v736_v8 }
 0x489   :  { %v746_v11 = vsel %vm745_vm6, %v744_v10, %v739_v9 }
 0x48a   :  { %v748_v12 = vrot.slane %v746_v11, 1  ;;  %v750_v13 = vadd.f32 1.0, %v746_v11 }
 0x48c   :  { %v751_v14 = vadd.f32 1.0, %v748_v12  ;;  %v754_v15 = vperm.slane %v750_v13, 0 }
 0x48e   :  { %v755_v16 = vperm.slane %v751_v14, 0  ;;  %v758_v17 = vmul.f32 %v754_v15, %v659_v38 }
 0x490   :  { %v759_v18 = vmul.f32 %v755_v16, %v661_v39  ;;  %762 = vst [vmem:[#allocation1] ss:$2 sm:$0xff] %v758_v17 }
 0x492   :  { %764 = vst [vmem:[#allocation1 + $0x1] ss:$2 sm:$0xff] %v759_v18 }
 0x499   :  { %v765_v19 = vld.sshfl [vmem:[#allocation1] sm:$0xff pattern:$0x75316420] }
 0x49a   :  { %767 = vst.msk [vmem:[%s1326_s10] sm:$0xff] %vm227_vm2, %v765_v19 }

</bundles_post_ra>
